<compile_context>
chip_gen: v6e
topology: v6e:2x2x1
jax: 0.10.0
libtpu: 0.0.40
codegen_flags: <defaults>
</compile_context>

<pallas_src>
import jax
import jax.numpy as jnp
from jax.experimental import pallas as pl
from jax.experimental.pallas import tpu as pltpu

# ---------------- model hyper-parameters (small, synthetic) ----------------
NUM_GRAPH_BATCHES = 8        # independent forward passes per call
GRAPH_BATCHES_PER_STEP = 4   # graph-batches fused into one grid step (grid = B / this)
NUM_NODES = 16               # nodes per graph-batch
NUM_EDGES = 48               # edges per graph-batch
NUM_NODE_FEATURES = 8
EDGE_FEATURE_DIM = 4
HIDDEN_DIM = 32
OUTPUT_DIM = 4
NUM_GNN_LAYERS = 2
NUM_GRAPHS = 2               # graphs inside each graph-batch (global_add_pool targets)

_MSG_EPS = 1e-7              # GENConv message eps
_NORM_EPS = 1e-12            # F.normalize eps
_BN_EPS = 1e-5               # BatchNorm eps
_LEAKY_SLOPE = 0.01          # LeakyReLU default


def _ru(v, m):
    return (v + m - 1) // m * m


def _leaky_relu(v):
    return jnp.where(v >= 0, v, _LEAKY_SLOPE * v)


def _layout(F, De, H, O, L):
    """Static offsets inside the single 128-lane parameter slab and the data slab."""
    H2, Hh = 2 * H, H // 2
    LW = max(F, De + 2)                     # data-slab lane width: feats | src | .. | 1.0
    assert H2 + 2 * H <= 128, "per-layer param block assumes 2H + H + H <= 128 lanes"
    assert H + Hh + O <= 128, "misc param block assumes H + H/2 + O <= 128 lanes"
    plh = _ru(max(H2, H + 3, LW), 8)        # per-layer block height (rows)
    misc_vec = max(F, H, Hh)                # first free row below emb_w / ro_w1 / ro_w2
    misc_h = _ru(misc_vec + 3, 8)
    lay = {
        'LW': LW, 'SRC_LANE': De,
        'PLH': plh,
        # per-layer block (row offsets relative to i*PLH)
        'b1': H, 'b2': H + 1, 'msc': H + 2,
        # misc block (row offsets relative to MISC)
        'MISC': L * plh,
        'emb_b': misc_vec, 'ro_b1': misc_vec + 1, 'ro_b2': misc_vec + 2,
        'ROWS': L * plh + misc_h,
    }
    return lay


def _make_kernel(NT, ET, GT, F, De, H, O, L, lay):
    H2, Hh = 2 * H, H // 2
    LW, PLH, MISC = lay['LW'], lay['PLH'], lay['MISC']
    SRC = lay['SRC_LANE']

    def kernel(data_ref, idx_ref, p_ref, out_ref):
        f32, i32 = jnp.float32, jnp.int32

        nodes = data_ref[0:NT, 0:F]                   # [NT, F]   node features
        edges = data_ref[NT:NT + ET, :]               # [ET, LW]  feats | src | .. | 1.0

        # ---- node embedding: [NT, F] @ [F, H] + [1, H] ----
        emb_w = p_ref[MISC:MISC + F, 0:H]
        emb_b = p_ref[MISC + lay['emb_b']:MISC + lay['emb_b'] + 1, 0:H]
        x = jnp.dot(nodes, emb_w, preferred_element_type=f32) + emb_b        # [NT, H]

        # ---- block-diagonal one-hot operators (indices pre-offset per graph-batch) ----
        dst_row = idx_ref[0:1, 0:ET]                                          # [1, ET]
        s_dst = (jax.lax.broadcasted_iota(i32, (NT, ET), 0) == dst_row).astype(f32)
        src_col = edges[:, SRC:SRC + 1].astype(i32)                           # [ET, 1]
        g_src = (src_col == jax.lax.broadcasted_iota(i32, (ET, NT), 1)).astype(f32)

        for i in range(L):      # static unroll (tiny trip count)
            base = i * PLH
            w1 = p_ref[base:base + H, 0:H2]                     # MLP Linear(H, 2H)
            w2 = p_ref[base:base + H2, H2:H2 + H]               # MLP Linear(2H, H), BN folded
            we = p_ref[base:base + LW, H2 + H:H2 + 2 * H]       # lin_edge W (+ bias row)
            b1 = p_ref[base + lay['b1']:base + lay['b1'] + 1, 0:H2]
            b2 = p_ref[base + lay['b2']:base + lay['b2'] + 1, 0:H]   # BN shift folded in
            msg_scale = p_ref[base + lay['msc']:base + lay['msc'] + 1, 0:1]

            # message: relu(x[src] + lin_edge(edge_attr)) + eps               -> [ET, H]
            e_feat = jnp.dot(edges, we, preferred_element_type=f32)  # bias via ones-lane
            x_src = jnp.dot(g_src, x, preferred_element_type=f32)
            msg = jnp.maximum(x_src + e_feat, 0.0) + _MSG_EPS

            # aggr='add': scatter-add over destination nodes                  -> [NT, H]
            agg = jnp.dot(s_dst, msg, preferred_element_type=f32)

            # MessageNorm (learned scale) + residual, one per-row scalar ratio (EUP rsqrt)
            msg_sq = jnp.sum(agg * agg, axis=-1, keepdims=True)
            x_sq = jnp.sum(x * x, axis=-1, keepdims=True)
            ratio = msg_scale * jnp.sqrt(x_sq) * jax.lax.rsqrt(
                jnp.maximum(msg_sq, _NORM_EPS * _NORM_EPS))                   # [NT, 1]
            out = agg * ratio + x

            # GENConv internal MLP; BN(eval) + LeakyReLU (dropout(eval) -> identity)
            h1 = jnp.maximum(jnp.dot(out, w1, preferred_element_type=f32) + b1, 0.0)
            x = jnp.dot(h1, w2, preferred_element_type=f32) + b2
            x = _leaky_relu(x)

        # ---- global_add_pool over the block-diagonal graph ids              -> [GT, H] ----
        batch_row = idx_ref[1:2, 0:NT]
        pool = (jax.lax.broadcasted_iota(i32, (GT, NT), 0) == batch_row).astype(f32)
        x_graph = jnp.dot(pool, x, preferred_element_type=f32)

        # ---- readout: Linear(H, H//2) -> LeakyReLU -> (dropout=id) -> Linear(H//2, O) ----
        ro_w1 = p_ref[MISC:MISC + H, H:H + Hh]
        ro_b1 = p_ref[MISC + lay['ro_b1']:MISC + lay['ro_b1'] + 1, 0:Hh]
        ro_w2 = p_ref[MISC:MISC + Hh, H + Hh:H + Hh + O]
        ro_b2 = p_ref[MISC + lay['ro_b2']:MISC + lay['ro_b2'] + 1, 0:O]
        h = _leaky_relu(jnp.dot(x_graph, ro_w1, preferred_element_type=f32) + ro_b1)
        out_ref[...] = jnp.dot(h, ro_w2, preferred_element_type=f32) + ro_b2

    return kernel


def _pack_params(params, F, De, H, O, L, lay):
    """Host-side packing: fold BatchNorm + lin_edge bias, build ONE 128-lane slab."""
    f32 = jnp.float32
    H2, Hh = 2 * H, H // 2
    LW, PLH, MISC = lay['LW'], lay['PLH'], lay['MISC']

    # Fold eval-mode BatchNorm into the second MLP linear.
    bn_scale = (params['bn_g'] * jax.lax.rsqrt(params['bn_v'] + _BN_EPS)).astype(f32)  # [L,1,H]
    w2f = params['w2'].astype(f32) * bn_scale                                          # [L,2H,H]
    b2f = (params['b2'].astype(f32) * bn_scale
           + params['bn_b'].astype(f32) - params['bn_m'].astype(f32) * bn_scale)       # [L,1,H]

    P = jnp.zeros((lay['ROWS'], 128), f32)
    for i in range(L):
        base = i * PLH
        P = P.at[base:base + H, 0:H2].set(params['w1'][i].astype(f32))
        P = P.at[base:base + H2, H2:H2 + H].set(w2f[i])
        P = P.at[base:base + De, H2 + H:H2 + 2 * H].set(params['we'][i].astype(f32))
        P = P.at[base + LW - 1, H2 + H:H2 + 2 * H].set(params['be'][i, 0].astype(f32))
        P = P.at[base + lay['b1'], 0:H2].set(params['b1'][i, 0].astype(f32))
        P = P.at[base + lay['b2'], 0:H].set(b2f[i, 0])
        P = P.at[base + lay['msc'], 0].set(params['scale'][i, 0].astype(f32))
    P = P.at[MISC:MISC + F, 0:H].set(params['emb_w'].astype(f32))
    P = P.at[MISC:MISC + H, H:H + Hh].set(params['ro_w1'].astype(f32))
    P = P.at[MISC:MISC + Hh, H + Hh:H + Hh + O].set(params['ro_w2'].astype(f32))
    P = P.at[MISC + lay['emb_b'], 0:H].set(params['emb_b'][0].astype(f32))
    P = P.at[MISC + lay['ro_b1'], 0:Hh].set(params['ro_b1'][0].astype(f32))
    P = P.at[MISC + lay['ro_b2'], 0:O].set(params['ro_b2'][0].astype(f32))
    return P


def edge_attr_gnn_forward(x, edge_attr, edge_src, edge_dst, node_batch, params,
                          *, num_graphs, output_dim, graph_batches_per_step=None):
    """Batched forward: leading dim B = independent graph-batches; several per grid step."""
    f32 = jnp.float32
    B, N, F = x.shape
    _, E, De = edge_attr.shape
    G, O = num_graphs, output_dim
    H = params['emb_w'].shape[1]
    L = params['we'].shape[0]
    H2, Hh = 2 * H, H // 2

    Bb = graph_batches_per_step if graph_batches_per_step else min(B, GRAPH_BATCHES_PER_STEP)
    assert B % Bb == 0, "B must be divisible by graph_batches_per_step"
    steps = B // Bb
    NT, ET, GT = Bb * N, Bb * E, Bb * G

    lay = _layout(F, De, H, O, L)
    LW = lay['LW']

    # ---- host-side data packing: node+edge slab, index slab, parameter slab ----
    data = jnp.zeros((steps, NT + ET, LW), f32)
    data = data.at[:, 0:NT, 0:F].set(x.astype(f32).reshape(steps, NT, F))
    data = data.at[:, NT:, 0:De].set(edge_attr.astype(f32).reshape(steps, ET, De))

    n_off = jnp.repeat(jnp.arange(Bb, dtype=jnp.int32) * N, E)          # [ET]
    g_off = jnp.repeat(jnp.arange(Bb, dtype=jnp.int32) * G, N)          # [NT]
    src_off = edge_src.astype(jnp.int32).reshape(steps, ET) + n_off[None, :]
    dst_off = edge_dst.astype(jnp.int32).reshape(steps, ET) + n_off[None, :]
    bat_off = node_batch.astype(jnp.int32).reshape(steps, NT) + g_off[None, :]

    data = data.at[:, NT:, lay['SRC_LANE']].set(src_off.astype(f32))    # exact small ints
    data = data.at[:, NT:, LW - 1].set(1.0)                             # lin_edge bias lane

    WI = _ru(max(ET, NT), 128)
    idx = jnp.full((steps, 8, WI), -1, jnp.int32)
    idx = idx.at[:, 0, 0:ET].set(dst_off)
    idx = idx.at[:, 1, 0:NT].set(bat_off)

    pslab = _pack_params(params, F, De, H, O, L, lay)
    kernel = _make_kernel(NT, ET, GT, F, De, H, O, L, lay)

    # advisory cost estimate so XLA can overlap this small call with surrounding HLO
    mm_flops = (2 * NT * F * H
                + L * (2 * ET * LW * H + 2 * ET * NT * H + 2 * NT * ET * H
                       + 2 * NT * H * H2 + 2 * NT * H2 * H)
                + 2 * GT * NT * H + 2 * GT * H * Hh + 2 * GT * Hh * O)
    cost = pl.CostEstimate(
        flops=steps * mm_flops,
        transcendentals=steps * L * 2 * NT,
        bytes_accessed=int(data.size + pslab.size + idx.size + steps * GT * O) * 4)

    out = pl.pallas_call(
        kernel,
        out_shape=jax.ShapeDtypeStruct((steps, GT, O), f32),
        grid=(steps,),
        in_specs=[
            pl.BlockSpec((None, NT + ET, LW), lambda s: (s, 0, 0)),     # node+edge slab
            pl.BlockSpec((None, 8, WI), lambda s: (s, 0, 0)),           # dst / graph-id rows
            pl.BlockSpec((lay['ROWS'], 128), lambda s: (0, 0)),         # shared param slab
        ],
        out_specs=pl.BlockSpec((None, GT, O), lambda s: (s, 0, 0)),
        compiler_params=pltpu.CompilerParams(
            dimension_semantics=("parallel",)),   # v7x: steps split across both TCs
        cost_estimate=cost,
    )(data, idx, pslab)

    return out.reshape(B, G, O)


def _init_params(key, F, De, H, O, L):
    ks = jax.random.split(key, 16)
    f32 = jnp.float32

    def w(k, shape, scale=0.2):
        return (scale * jax.random.normal(k, shape)).astype(f32)

    return {
        # node embedding Linear(F, H)
        'emb_w': w(ks[0], (F, H)),
        'emb_b': w(ks[1], (1, H)),
        # stacked GENConv params
        'we': w(ks[2], (L, De, H)),              # lin_edge weight
        'be': w(ks[3], (L, 1, H)),               # lin_edge bias
        'scale': 1.0 + w(ks[4], (L, 1), 0.1),    # MessageNorm learnable scale (~1.0)
        'w1': w(ks[5], (L, H, 2 * H)),           # MLP Linear(H, 2H)
        'b1': w(ks[6], (L, 1, 2 * H)),
        'w2': w(ks[7], (L, 2 * H, H)),           # MLP Linear(2H, H)
        'b2': w(ks[8], (L, 1, H)),
        # BatchNorm (eval) params -- folded into w2/b2 on the host
        'bn_g': 1.0 + w(ks[9], (L, 1, H), 0.1),
        'bn_b': w(ks[10], (L, 1, H), 0.1),
        'bn_m': w(ks[11], (L, 1, H), 0.1),
        'bn_v': jnp.abs(w(ks[12], (L, 1, H), 0.1)) + 0.5,
        # readout
        'ro_w1': w(ks[13], (H, H // 2)),
        'ro_b1': w(ks[14], (1, H // 2)),
        'ro_w2': w(ks[15], (H // 2, O)),
        'ro_b2': jnp.zeros((1, O), f32),
    }


if __name__ == "__main__":
    key = jax.random.PRNGKey(0)
    k_x, k_ea, k_src, k_dst, k_p = jax.random.split(key, 5)
    B = NUM_GRAPH_BATCHES

    x = jax.random.normal(k_x, (B, NUM_NODES, NUM_NODE_FEATURES), dtype=jnp.float32)
    edge_attr = jax.random.normal(k_ea, (B, NUM_EDGES, EDGE_FEATURE_DIM), dtype=jnp.float32)
    edge_src = jax.random.randint(k_src, (B, NUM_EDGES), 0, NUM_NODES, dtype=jnp.int32)
    edge_dst = jax.random.randint(k_dst, (B, NUM_EDGES), 0, NUM_NODES, dtype=jnp.int32)
    # first half of the nodes belong to graph 0, second half to graph 1 (per graph-batch)
    node_batch = jnp.broadcast_to(
        jnp.concatenate([jnp.zeros((NUM_NODES // 2,), jnp.int32),
                         jnp.ones((NUM_NODES - NUM_NODES // 2,), jnp.int32)]),
        (B, NUM_NODES))

    params = _init_params(k_p, NUM_NODE_FEATURES, EDGE_FEATURE_DIM,
                          HIDDEN_DIM, OUTPUT_DIM, NUM_GNN_LAYERS)

    out = edge_attr_gnn_forward(x, edge_attr, edge_src, edge_dst, node_batch, params,
                                num_graphs=NUM_GRAPHS, output_dim=OUTPUT_DIM,
                                graph_batches_per_step=GRAPH_BATCHES_PER_STEP)
    out = jax.block_until_ready(out)
    assert out.shape == (B, NUM_GRAPHS, OUTPUT_DIM)
    assert bool(jnp.all(jnp.isfinite(out)))
    print("KERNEL_OK")
</pallas_src>

<mosaic_0001>
module attributes {stable_mosaic.version = 11 : i64} {
  func.func @kernel(%arg0: i32, %arg1: memref<1x256x8xf32, #tpu.memory_space<vmem>>, %arg2: memref<1x8x256xi32, #tpu.memory_space<vmem>>, %arg3: memref<168x128xf32, #tpu.memory_space<vmem>>, %arg4: memref<1x8x4xf32, #tpu.memory_space<vmem>>) attributes {dimension_semantics = [#tpu.dimension_semantics<parallel>], iteration_bounds = array<i64: 2>, scalar_prefetch = 0 : i64, scratch_operands = 0 : i64, tpu.core_type = #tpu.core_type<tc>, window_params = [{transform_indices = @transform_0, window_bounds = array<i64: 1, 256, 8>}, {transform_indices = @transform_1, window_bounds = array<i64: 1, 8, 256>}, {pipeline_mode = #tpu.pipeline_mode<synchronous>, transform_indices = @transform_2, window_bounds = array<i64: 168, 128>}, {transform_indices = @transform_3, window_bounds = array<i64: 1, 8, 4>}]} {
    %c0 = arith.constant 0 : index
    %c0_0 = arith.constant 0 : index
    %c0_1 = arith.constant 0 : index
    %0 = vector.load %arg1[%c0, %c0_0, %c0_1] : memref<1x256x8xf32, #tpu.memory_space<vmem>>, vector<1x64x8xf32>
    %1 = vector.shape_cast %0 : vector<1x64x8xf32> to vector<64x8xf32>
    %c0_2 = arith.constant 0 : index
    %c64 = arith.constant 64 : index
    %c0_3 = arith.constant 0 : index
    %2 = vector.load %arg1[%c0_2, %c64, %c0_3] : memref<1x256x8xf32, #tpu.memory_space<vmem>>, vector<1x192x8xf32>
    %3 = vector.shape_cast %2 : vector<1x192x8xf32> to vector<192x8xf32>
    %c128 = arith.constant 128 : index
    %c0_4 = arith.constant 0 : index
    %4 = vector.load %arg3[%c128, %c0_4] : memref<168x128xf32, #tpu.memory_space<vmem>>, vector<8x32xf32>
    %c160 = arith.constant 160 : index
    %c0_5 = arith.constant 0 : index
    %5 = vector.load %arg3[%c160, %c0_5] : memref<168x128xf32, #tpu.memory_space<vmem>>, vector<1x32xf32>
    %cst = arith.constant dense<0.000000e+00> : vector<64x32xf32>
    %6 = tpu.matmul %1, %4, %cst {dimension_numbers = #tpu.dot_dimension_numbers<[1], [0], [0], [1], [0, 0, 1, 1], [], []>} : vector<64x8xf32>, vector<8x32xf32>, vector<64x32xf32> -> vector<64x32xf32>
    %7 = vector.broadcast %5 : vector<1x32xf32> to vector<64x32xf32>
    %8 = arith.addf %6, %7 : vector<64x32xf32>
    %c0_6 = arith.constant 0 : index
    %c0_7 = arith.constant 0 : index
    %c0_8 = arith.constant 0 : index
    %9 = vector.load %arg2[%c0_6, %c0_7, %c0_8] : memref<1x8x256xi32, #tpu.memory_space<vmem>>, vector<1x1x192xi32>
    %10 = vector.shape_cast %9 : vector<1x1x192xi32> to vector<1x192xi32>
    %11 = tpu.iota {dimensions = array<i32: 0>} : vector<64x192xi32>
    %12 = vector.broadcast %10 : vector<1x192xi32> to vector<64x192xi32>
    %13 = arith.cmpi eq, %11, %12 : vector<64x192xi32>
    %14 = arith.extui %13 : vector<64x192xi1> to vector<64x192xi32>
    %15 = arith.sitofp %14 : vector<64x192xi32> to vector<64x192xf32>
    %16 = vector.extract_strided_slice %3 {offsets = [0, 4], sizes = [192, 1], strides = [1, 1]} : vector<192x8xf32> to vector<192x1xf32>
    %17 = arith.fptosi %16 : vector<192x1xf32> to vector<192x1xi32>
    %18 = tpu.iota {dimensions = array<i32: 1>} : vector<192x64xi32>
    %19 = vector.broadcast %17 : vector<192x1xi32> to vector<192x64xi32>
    %20 = arith.cmpi eq, %19, %18 : vector<192x64xi32>
    %21 = arith.extui %20 : vector<192x64xi1> to vector<192x64xi32>
    %22 = arith.sitofp %21 : vector<192x64xi32> to vector<192x64xf32>
    %c0_9 = arith.constant 0 : index
    %c0_10 = arith.constant 0 : index
    %23 = vector.load %arg3[%c0_9, %c0_10] : memref<168x128xf32, #tpu.memory_space<vmem>>, vector<32x64xf32>
    %c0_11 = arith.constant 0 : index
    %c64_12 = arith.constant 64 : index
    %24 = vector.load %arg3[%c0_11, %c64_12] : memref<168x128xf32, #tpu.memory_space<vmem>>, vector<64x32xf32>
    %c0_13 = arith.constant 0 : index
    %c96 = arith.constant 96 : index
    %25 = vector.load %arg3[%c0_13, %c96] : memref<168x128xf32, #tpu.memory_space<vmem>>, vector<8x32xf32>
    %c32 = arith.constant 32 : index
    %c0_14 = arith.constant 0 : index
    %26 = vector.load %arg3[%c32, %c0_14] : memref<168x128xf32, #tpu.memory_space<vmem>>, vector<1x64xf32>
    %c33 = arith.constant 33 : index
    %c0_15 = arith.constant 0 : index
    %27 = vector.load %arg3[%c33, %c0_15] : memref<168x128xf32, #tpu.memory_space<vmem>>, vector<1x32xf32>
    %c34 = arith.constant 34 : index
    %c0_16 = arith.constant 0 : index
    %28 = vector.load %arg3[%c34, %c0_16] : memref<168x128xf32, #tpu.memory_space<vmem>>, vector<1x1xf32>
    %cst_17 = arith.constant dense<0.000000e+00> : vector<192x32xf32>
    %29 = tpu.matmul %3, %25, %cst_17 {dimension_numbers = #tpu.dot_dimension_numbers<[1], [0], [0], [1], [0, 0, 1, 1], [], []>} : vector<192x8xf32>, vector<8x32xf32>, vector<192x32xf32> -> vector<192x32xf32>
    %cst_18 = arith.constant dense<0.000000e+00> : vector<192x32xf32>
    %30 = tpu.matmul %22, %8, %cst_18 {dimension_numbers = #tpu.dot_dimension_numbers<[1], [0], [0], [1], [0, 0, 1, 1], [], []>} : vector<192x64xf32>, vector<64x32xf32>, vector<192x32xf32> -> vector<192x32xf32>
    %31 = arith.addf %30, %29 : vector<192x32xf32>
    %cst_19 = arith.constant 0.000000e+00 : f32
    %32 = vector.broadcast %cst_19 : f32 to vector<192x32xf32>
    %33 = arith.maximumf %31, %32 : vector<192x32xf32>
    %cst_20 = arith.constant 1.000000e-07 : f32
    %34 = vector.broadcast %cst_20 : f32 to vector<192x32xf32>
    %35 = arith.addf %33, %34 : vector<192x32xf32>
    %cst_21 = arith.constant dense<0.000000e+00> : vector<64x32xf32>
    %36 = tpu.matmul %15, %35, %cst_21 {dimension_numbers = #tpu.dot_dimension_numbers<[1], [0], [0], [1], [0, 0, 1, 1], [], []>} : vector<64x192xf32>, vector<192x32xf32>, vector<64x32xf32> -> vector<64x32xf32>
    %37 = arith.mulf %36, %36 : vector<64x32xf32>
    %cst_22 = arith.constant dense<0.000000e+00> : vector<64xf32>
    %38 = vector.multi_reduction <add>, %37, %cst_22 [1] : vector<64x32xf32> to vector<64xf32>
    %39 = vector.shape_cast %38 : vector<64xf32> to vector<64x1xf32>
    %40 = arith.mulf %8, %8 : vector<64x32xf32>
    %cst_23 = arith.constant dense<0.000000e+00> : vector<64xf32>
    %41 = vector.multi_reduction <add>, %40, %cst_23 [1] : vector<64x32xf32> to vector<64xf32>
    %42 = vector.shape_cast %41 : vector<64xf32> to vector<64x1xf32>
    %43 = math.sqrt %42 : vector<64x1xf32>
    %44 = vector.broadcast %28 : vector<1x1xf32> to vector<64x1xf32>
    %45 = arith.mulf %44, %43 : vector<64x1xf32>
    %cst_24 = arith.constant 1.000000e-24 : f32
    %46 = vector.broadcast %cst_24 : f32 to vector<64x1xf32>
    %47 = arith.maximumf %39, %46 : vector<64x1xf32>
    %48 = math.rsqrt %47 : vector<64x1xf32>
    %49 = arith.mulf %45, %48 : vector<64x1xf32>
    %50 = vector.broadcast %49 : vector<64x1xf32> to vector<64x32xf32>
    %51 = arith.mulf %36, %50 : vector<64x32xf32>
    %52 = arith.addf %51, %8 : vector<64x32xf32>
    %cst_25 = arith.constant dense<0.000000e+00> : vector<64x64xf32>
    %53 = tpu.matmul %52, %23, %cst_25 {dimension_numbers = #tpu.dot_dimension_numbers<[1], [0], [0], [1], [0, 0, 1, 1], [], []>} : vector<64x32xf32>, vector<32x64xf32>, vector<64x64xf32> -> vector<64x64xf32>
    %54 = vector.broadcast %26 : vector<1x64xf32> to vector<64x64xf32>
    %55 = arith.addf %53, %54 : vector<64x64xf32>
    %cst_26 = arith.constant 0.000000e+00 : f32
    %56 = vector.broadcast %cst_26 : f32 to vector<64x64xf32>
    %57 = arith.maximumf %55, %56 : vector<64x64xf32>
    %cst_27 = arith.constant dense<0.000000e+00> : vector<64x32xf32>
    %58 = tpu.matmul %57, %24, %cst_27 {dimension_numbers = #tpu.dot_dimension_numbers<[1], [0], [0], [1], [0, 0, 1, 1], [], []>} : vector<64x64xf32>, vector<64x32xf32>, vector<64x32xf32> -> vector<64x32xf32>
    %59 = vector.broadcast %27 : vector<1x32xf32> to vector<64x32xf32>
    %60 = arith.addf %58, %59 : vector<64x32xf32>
    %cst_28 = arith.constant 0.000000e+00 : f32
    %61 = vector.broadcast %cst_28 : f32 to vector<64x32xf32>
    %62 = arith.cmpf oge, %60, %61 : vector<64x32xf32>
    %cst_29 = arith.constant 0.00999999977 : f32
    %63 = vector.broadcast %cst_29 : f32 to vector<64x32xf32>
    %64 = arith.mulf %63, %60 : vector<64x32xf32>
    %65 = arith.select %62, %60, %64 : vector<64x32xi1>, vector<64x32xf32>
    %c64_30 = arith.constant 64 : index
    %c0_31 = arith.constant 0 : index
    %66 = vector.load %arg3[%c64_30, %c0_31] : memref<168x128xf32, #tpu.memory_space<vmem>>, vector<32x64xf32>
    %c64_32 = arith.constant 64 : index
    %c64_33 = arith.constant 64 : index
    %67 = vector.load %arg3[%c64_32, %c64_33] : memref<168x128xf32, #tpu.memory_space<vmem>>, vector<64x32xf32>
    %c64_34 = arith.constant 64 : index
    %c96_35 = arith.constant 96 : index
    %68 = vector.load %arg3[%c64_34, %c96_35] : memref<168x128xf32, #tpu.memory_space<vmem>>, vector<8x32xf32>
    %c96_36 = arith.constant 96 : index
    %c0_37 = arith.constant 0 : index
    %69 = vector.load %arg3[%c96_36, %c0_37] : memref<168x128xf32, #tpu.memory_space<vmem>>, vector<1x64xf32>
    %c97 = arith.constant 97 : index
    %c0_38 = arith.constant 0 : index
    %70 = vector.load %arg3[%c97, %c0_38] : memref<168x128xf32, #tpu.memory_space<vmem>>, vector<1x32xf32>
    %c98 = arith.constant 98 : index
    %c0_39 = arith.constant 0 : index
    %71 = vector.load %arg3[%c98, %c0_39] : memref<168x128xf32, #tpu.memory_space<vmem>>, vector<1x1xf32>
    %cst_40 = arith.constant dense<0.000000e+00> : vector<192x32xf32>
    %72 = tpu.matmul %3, %68, %cst_40 {dimension_numbers = #tpu.dot_dimension_numbers<[1], [0], [0], [1], [0, 0, 1, 1], [], []>} : vector<192x8xf32>, vector<8x32xf32>, vector<192x32xf32> -> vector<192x32xf32>
    %cst_41 = arith.constant dense<0.000000e+00> : vector<192x32xf32>
    %73 = tpu.matmul %22, %65, %cst_41 {dimension_numbers = #tpu.dot_dimension_numbers<[1], [0], [0], [1], [0, 0, 1, 1], [], []>} : vector<192x64xf32>, vector<64x32xf32>, vector<192x32xf32> -> vector<192x32xf32>
    %74 = arith.addf %73, %72 : vector<192x32xf32>
    %cst_42 = arith.constant 0.000000e+00 : f32
    %75 = vector.broadcast %cst_42 : f32 to vector<192x32xf32>
    %76 = arith.maximumf %74, %75 : vector<192x32xf32>
    %cst_43 = arith.constant 1.000000e-07 : f32
    %77 = vector.broadcast %cst_43 : f32 to vector<192x32xf32>
    %78 = arith.addf %76, %77 : vector<192x32xf32>
    %cst_44 = arith.constant dense<0.000000e+00> : vector<64x32xf32>
    %79 = tpu.matmul %15, %78, %cst_44 {dimension_numbers = #tpu.dot_dimension_numbers<[1], [0], [0], [1], [0, 0, 1, 1], [], []>} : vector<64x192xf32>, vector<192x32xf32>, vector<64x32xf32> -> vector<64x32xf32>
    %80 = arith.mulf %79, %79 : vector<64x32xf32>
    %cst_45 = arith.constant dense<0.000000e+00> : vector<64xf32>
    %81 = vector.multi_reduction <add>, %80, %cst_45 [1] : vector<64x32xf32> to vector<64xf32>
    %82 = vector.shape_cast %81 : vector<64xf32> to vector<64x1xf32>
    %83 = arith.mulf %65, %65 : vector<64x32xf32>
    %cst_46 = arith.constant dense<0.000000e+00> : vector<64xf32>
    %84 = vector.multi_reduction <add>, %83, %cst_46 [1] : vector<64x32xf32> to vector<64xf32>
    %85 = vector.shape_cast %84 : vector<64xf32> to vector<64x1xf32>
    %86 = math.sqrt %85 : vector<64x1xf32>
    %87 = vector.broadcast %71 : vector<1x1xf32> to vector<64x1xf32>
    %88 = arith.mulf %87, %86 : vector<64x1xf32>
    %cst_47 = arith.constant 1.000000e-24 : f32
    %89 = vector.broadcast %cst_47 : f32 to vector<64x1xf32>
    %90 = arith.maximumf %82, %89 : vector<64x1xf32>
    %91 = math.rsqrt %90 : vector<64x1xf32>
    %92 = arith.mulf %88, %91 : vector<64x1xf32>
    %93 = vector.broadcast %92 : vector<64x1xf32> to vector<64x32xf32>
    %94 = arith.mulf %79, %93 : vector<64x32xf32>
    %95 = arith.addf %94, %65 : vector<64x32xf32>
    %cst_48 = arith.constant dense<0.000000e+00> : vector<64x64xf32>
    %96 = tpu.matmul %95, %66, %cst_48 {dimension_numbers = #tpu.dot_dimension_numbers<[1], [0], [0], [1], [0, 0, 1, 1], [], []>} : vector<64x32xf32>, vector<32x64xf32>, vector<64x64xf32> -> vector<64x64xf32>
    %97 = vector.broadcast %69 : vector<1x64xf32> to vector<64x64xf32>
    %98 = arith.addf %96, %97 : vector<64x64xf32>
    %cst_49 = arith.constant 0.000000e+00 : f32
    %99 = vector.broadcast %cst_49 : f32 to vector<64x64xf32>
    %100 = arith.maximumf %98, %99 : vector<64x64xf32>
    %cst_50 = arith.constant dense<0.000000e+00> : vector<64x32xf32>
    %101 = tpu.matmul %100, %67, %cst_50 {dimension_numbers = #tpu.dot_dimension_numbers<[1], [0], [0], [1], [0, 0, 1, 1], [], []>} : vector<64x64xf32>, vector<64x32xf32>, vector<64x32xf32> -> vector<64x32xf32>
    %102 = vector.broadcast %70 : vector<1x32xf32> to vector<64x32xf32>
    %103 = arith.addf %101, %102 : vector<64x32xf32>
    %cst_51 = arith.constant 0.000000e+00 : f32
    %104 = vector.broadcast %cst_51 : f32 to vector<64x32xf32>
    %105 = arith.cmpf oge, %103, %104 : vector<64x32xf32>
    %cst_52 = arith.constant 0.00999999977 : f32
    %106 = vector.broadcast %cst_52 : f32 to vector<64x32xf32>
    %107 = arith.mulf %106, %103 : vector<64x32xf32>
    %108 = arith.select %105, %103, %107 : vector<64x32xi1>, vector<64x32xf32>
    %c0_53 = arith.constant 0 : index
    %c1 = arith.constant 1 : index
    %c0_54 = arith.constant 0 : index
    %109 = vector.load %arg2[%c0_53, %c1, %c0_54] : memref<1x8x256xi32, #tpu.memory_space<vmem>>, vector<1x1x64xi32>
    %110 = vector.shape_cast %109 : vector<1x1x64xi32> to vector<1x64xi32>
    %111 = tpu.iota {dimensions = array<i32: 0>} : vector<8x64xi32>
    %112 = vector.broadcast %110 : vector<1x64xi32> to vector<8x64xi32>
    %113 = arith.cmpi eq, %111, %112 : vector<8x64xi32>
    %114 = arith.extui %113 : vector<8x64xi1> to vector<8x64xi32>
    %115 = arith.sitofp %114 : vector<8x64xi32> to vector<8x64xf32>
    %cst_55 = arith.constant dense<0.000000e+00> : vector<8x32xf32>
    %116 = tpu.matmul %115, %108, %cst_55 {dimension_numbers = #tpu.dot_dimension_numbers<[1], [0], [0], [1], [0, 0, 1, 1], [], []>} : vector<8x64xf32>, vector<64x32xf32>, vector<8x32xf32> -> vector<8x32xf32>
    %c128_56 = arith.constant 128 : index
    %c32_57 = arith.constant 32 : index
    %117 = vector.load %arg3[%c128_56, %c32_57] : memref<168x128xf32, #tpu.memory_space<vmem>>, vector<32x16xf32>
    %c161 = arith.constant 161 : index
    %c0_58 = arith.constant 0 : index
    %118 = vector.load %arg3[%c161, %c0_58] : memref<168x128xf32, #tpu.memory_space<vmem>>, vector<1x16xf32>
    %c128_59 = arith.constant 128 : index
    %c48 = arith.constant 48 : index
    %119 = vector.load %arg3[%c128_59, %c48] : memref<168x128xf32, #tpu.memory_space<vmem>>, vector<16x4xf32>
    %c162 = arith.constant 162 : index
    %c0_60 = arith.constant 0 : index
    %120 = vector.load %arg3[%c162, %c0_60] : memref<168x128xf32, #tpu.memory_space<vmem>>, vector<1x4xf32>
    %cst_61 = arith.constant dense<0.000000e+00> : vector<8x16xf32>
    %121 = tpu.matmul %116, %117, %cst_61 {dimension_numbers = #tpu.dot_dimension_numbers<[1], [0], [0], [1], [0, 0, 1, 1], [], []>} : vector<8x32xf32>, vector<32x16xf32>, vector<8x16xf32> -> vector<8x16xf32>
    %122 = vector.broadcast %118 : vector<1x16xf32> to vector<8x16xf32>
    %123 = arith.addf %121, %122 : vector<8x16xf32>
    %cst_62 = arith.constant 0.000000e+00 : f32
    %124 = vector.broadcast %cst_62 : f32 to vector<8x16xf32>
    %125 = arith.cmpf oge, %123, %124 : vector<8x16xf32>
    %cst_63 = arith.constant 0.00999999977 : f32
    %126 = vector.broadcast %cst_63 : f32 to vector<8x16xf32>
    %127 = arith.mulf %126, %123 : vector<8x16xf32>
    %128 = arith.select %125, %123, %127 : vector<8x16xi1>, vector<8x16xf32>
    %cst_64 = arith.constant dense<0.000000e+00> : vector<8x4xf32>
    %129 = tpu.matmul %128, %119, %cst_64 {dimension_numbers = #tpu.dot_dimension_numbers<[1], [0], [0], [1], [0, 0, 1, 1], [], []>} : vector<8x16xf32>, vector<16x4xf32>, vector<8x4xf32> -> vector<8x4xf32>
    %130 = vector.broadcast %120 : vector<1x4xf32> to vector<8x4xf32>
    %131 = arith.addf %129, %130 : vector<8x4xf32>
    %c0_65 = arith.constant 0 : index
    %c0_66 = arith.constant 0 : index
    %c0_67 = arith.constant 0 : index
    %132 = vector.load %arg4[%c0_65, %c0_66, %c0_67] : memref<1x8x4xf32, #tpu.memory_space<vmem>>, vector<1x8x4xf32>
    %133 = vector.shape_cast %132 : vector<1x8x4xf32> to vector<8x4xf32>
    %134 = vector.shape_cast %131 : vector<8x4xf32> to vector<1x8x4xf32>
    tpu.vector_store %arg4[%c0_65, %c0_66, %c0_67], %134 {strides = array<i32>} : memref<1x8x4xf32, #tpu.memory_space<vmem>>, vector<1x8x4xf32>,
    return
  }
  func.func @transform_0(%arg0: i32) -> (i32, i32, i32) {
    %c0_i32 = arith.constant 0 : i32
    %c0_i32_0 = arith.constant 0 : i32
    %c0_i32_1 = arith.constant 0 : i32
    return %arg0, %c0_i32, %c0_i32_0 : i32, i32, i32
  }
  func.func @transform_1(%arg0: i32) -> (i32, i32, i32) {
    %c0_i32 = arith.constant 0 : i32
    %c0_i32_0 = arith.constant 0 : i32
    %c0_i32_1 = arith.constant 0 : i32
    return %arg0, %c0_i32, %c0_i32_0 : i32, i32, i32
  }
  func.func @transform_2(%arg0: i32) -> (i32, i32) {
    %c0_i32 = arith.constant 0 : i32
    %c0_i32_0 = arith.constant 0 : i32
    %c0_i32_1 = arith.constant 0 : i32
    return %c0_i32, %c0_i32_0 : i32, i32
  }
  func.func @transform_3(%arg0: i32) -> (i32, i32, i32) {
    %c0_i32 = arith.constant 0 : i32
    %c0_i32_0 = arith.constant 0 : i32
    %c0_i32_1 = arith.constant 0 : i32
    return %arg0, %c0_i32, %c0_i32_0 : i32, i32, i32
  }
}

</mosaic_0001>

<bundles_post_ra>
// kernel: tpu_custom_call.1
= control target key start
LH: loop header
LB: loop body
LE: loop exit
PB: predicated region body
PF: predicated region fallthrough
CT: control target
= control target key end

     0   :  { %s4205_s12 = smov 0   ;;  %s5533_s0 = inlined_call_operand.vmem [shape: f32[2,256,8], index: 0, kind: input, shape index: {}]   ;;  %s5534_s1 = inlined_call_operand.vmem [shape: s32[2,8,256], index: 1, kind: input, shape index: {}]   ;;  %s5535_s2 = inlined_call_operand.vmem [shape: f32[168,128], index: 2, kind: input, shape index: {}]   ;;  %s5536_s3 = inlined_call_operand.vmem [shape: f32[2,8,4], index: 3, kind: output, shape index: {}]  }
   0x1 LB: > { %s3251_s13 = sadd.s32 4294967295, %s4174_s12   ;;  %p3255_p0 = scmp.ge.s32.totalorder %s4174_s12, 1  ;;  %s4174_s12 = sphi %s4205_s12, %s13_s12  }
   0x2   : > { %p147_p1 = scmp.lt.s32.totalorder %s4174_s12, 3 }
   0x4   : > { %p148_p2 = pnand %p3255_p0, %p147_p1 }
   0x6   : > { %151 = sbr.rel (%p148_p2) target bundleno = 3219 (0xc93), region = 32 }
   0xb   : > { %v221_v0 = vld [vmem:[%s5535_s2 + $0x80] sm:$0xff]  ;;  %p175_p3 = scmp.lt.s32.totalorder %s3251_s13, 1  ;;  %v4176_v1 = vmov 4   ;;  %vm227_vm0 = vcmask 64512   ;;  %s4177_s22 = smov 32   ;;  %vm865_vm1 = vcmask 523264  }
   0xc   : > { %3682 = vmatprep.subr.mxu0 %v221_v0  ;;  %4074 = vset.pattern.permute.xlu0 %v4176_v1  ;;  %v593_v27 = vld [vmem:[%s5535_s2] sm:$0xff]  ;;  %vm1308_vm4 = vcmask 261120   ;;  %s4181_s18 = smov 64  }
   0xd   : > { %3683 = vmatpush3.msra.mxu0 %v221_v0  ;;  %s5638_s13 = smov (!%p175_p3, %s3251_s13), 1  ;;  %4075 = vset.pattern.permute.xlu1 %v4176_v1 }
   0xe   : > { %s3484_s16 = sshll.u32 %s5638_s13, 8  ;;  %s3485_s25 = sshll.u32 %s5638_s13, 4 }
   0xf   : > { %s4222_s19 = scalar_lea.vmem %s5533_s0, %s3484_s16  ;;  %s4590_s28 = scalar_lea.vmem %s5534_s1, %s3485_s25 }
  0x10   : > { %v189_v2 = vld [vmem:[%s4222_s19] sm:$0xff]  ;;  %v190_v3 = vld [vmem:[%s4222_s19 + $0x8] sm:$0xff]  ;;  %v191_v4 = vld [vmem:[%s4222_s19 + $0x10] sm:$0xff]  ;;  %s3260_s14 = sshll.u32 %s5638_s13, 3 }
  0x11   : > { %3684 = vmatprep.mubr.msk.f32.mxu0 %vm227_vm0, %v189_v2  ;;  %v197_v5 = vld [vmem:[%s4222_s19 + $0x40] sm:$0xff]  ;;  %v192_v6 = vld [vmem:[%s4222_s19 + $0x18] sm:$0xff]  ;;  %v4233_v8 = vld [vmem:[%s4222_s19 + $0x48] sm:$0xff]  ;;  %s188_s21 = scalar_lea.vmem %s5536_s3, %s3260_s14 }
  0x12   : > { %3685 = vmatmul.mubr.msk.f32.vlgmr.msra.gmra.mxu0 %vm227_vm0, %v190_v3  ;;  %v4009_v7 = vtrunc.f32 %v197_v5  ;;  %v4236_v9 = vld [vmem:[%s4222_s19 + $0x50] sm:$0xff]  ;;  %3698 = vmatprep.mubr.msk.f32.mxu1 %vm227_vm0, %v197_v5  ;;  %v193_v10 = vld [vmem:[%s4222_s19 + $0x20] sm:$0xff]  ;;  %v4011_v11 = vtrunc.f32 %v4233_v8  ;;  %v4243_v13 = vld [vmem:[%s4222_s19 + $0x58] sm:$0xff] }
  0x13   : > { %3687 = vmatprep.mubr.msk.f32.mxu0 %vm227_vm0, %v191_v4  ;;  %v4013_v12 = vtrunc.f32 %v4236_v9  ;;  %v4015_v15 = vtrunc.f32 %v4243_v13  ;;  %v4247_v16 = vld [vmem:[%s4222_s19 + $0x60] sm:$0xff]  ;;  %v194_v18 = vld [vmem:[%s4222_s19 + $0x28] sm:$0xff]  ;;  %v195_v20 = vld [vmem:[%s4222_s19 + $0x30] sm:$0xff] }
  0x14   : > { %v4010_v14 = vcvt.f32.s32 %v4009_v7  ;;  %v4012_v19 = vcvt.f32.s32 %v4011_v11  ;;  %v4254_v21 = vld [vmem:[%s4222_s19 + $0x68] sm:$0xff]  ;;  %v4017_v23 = vtrunc.f32 %v4247_v16  ;;  %v4258_v24 = vld [vmem:[%s4222_s19 + $0x70] sm:$0xff]  ;;  %v196_v25 = vld [vmem:[%s4222_s19 + $0x38] sm:$0xff] }
  0x15   : > { %v4014_v17 = vcvt.f32.s32 %v4013_v12  ;;  %v4016_v22 = vcvt.f32.s32 %v4015_v15  ;;  %v4019_v26 = vtrunc.f32 %v4254_v21  ;;  %v4268_v28 = vld [vmem:[%s4222_s19 + $0x78] sm:$0xff]  ;;  %v4021_v30 = vtrunc.f32 %v4258_v24  ;;  %v4272_v31 = vld [vmem:[%s4222_s19 + $0x80] sm:$0xff]  ;;  %v4278_v34 = vld [vmem:[%s4222_s19 + $0x88] sm:$0xff] }
  0x16   : > { %3688 = vmatmul.mubr.msk.f32.gmra.mxu0 %vm227_vm0, %v192_v6  ;;  %450 = vperm.xlu0 %4074, %v4010_v14   ;;  %v4018_v29 = vcvt.f32.s32 %v4017_v23  ;;  %v4023_v33 = vtrunc.f32 %v4268_v28  ;;  %v4025_v36 = vtrunc.f32 %v4272_v31  ;;  %v4282_v37 = vld [vmem:[%s4222_s19 + $0x90] sm:$0xff]  ;;  %v4027_v39 = vtrunc.f32 %v4278_v34  ;;  %v4286_v40 = vld [vmem:[%s4222_s19 + $0x98] sm:$0xff]  ;;  %v4290_v43 = vld [vmem:[%s4222_s19 + $0xa0] sm:$0xff] }
  0x17   : > { %3690 = vmatprep.mubr.msk.f32.mxu0 %vm227_vm0, %v193_v10  ;;  %456 = vperm.xlu1 %4075, %v4014_v17   ;;  %v4020_v32 = vcvt.f32.s32 %v4019_v26  ;;  %v4022_v35 = vcvt.f32.s32 %v4021_v30  ;;  %v4029_v42 = vtrunc.f32 %v4282_v37  ;;  %v4031_v45 = vtrunc.f32 %v4286_v40  ;;  %v4294_v46 = vld [vmem:[%s4222_s19 + $0xa8] sm:$0xff]  ;;  %v4298_v49 = vld [vmem:[%s4222_s19 + $0xb0] sm:$0xff]  ;;  %v4302_v52 = vld [vmem:[%s4222_s19 + $0xb8] sm:$0xff] }
  0x18   : > { %v4024_v38 = vcvt.f32.s32 %v4023_v33  ;;  %v4026_v41 = vcvt.f32.s32 %v4025_v36  ;;  %v4028_v44 = vcvt.f32.s32 %v4027_v39  ;;  %v4033_v48 = vtrunc.f32 %v4290_v43  ;;  %v4306_v55 = vld [vmem:[%s4222_s19 + $0xc0] sm:$0xff]  ;;  %v4310_v58 = vld [vmem:[%s4222_s19 + $0xc8] sm:$0xff]  ;;  %v4314_v61 = vld [vmem:[%s4222_s19 + $0xd0] sm:$0xff] }
  0x19   : > { %v4030_v47 = vcvt.f32.s32 %v4029_v42  ;;  %v4032_v50 = vcvt.f32.s32 %v4031_v45  ;;  %v4035_v51 = vtrunc.f32 %v4294_v46  ;;  %v4037_v54 = vtrunc.f32 %v4298_v49  ;;  %v216_v0 = vld [vmem:[%s4222_s19 + $0xd8] sm:$0xff]  ;;  %v217_v3 = vld [vmem:[%s4222_s19 + $0xe0] sm:$0xff]  ;;  %v218_v6 = vld [vmem:[%s4222_s19 + $0xe8] sm:$0xff] }
  0x1a   : > { %3691 = vmatmul.mubr.msk.f32.gmra.mxu0 %vm227_vm0, %v194_v18  ;;  %453 = vperm.xlu0 %4074, %v4012_v19   ;;  %v4034_v53 = vcvt.f32.s32 %v4033_v48  ;;  %v4039_v57 = vtrunc.f32 %v4302_v52  ;;  %v4041_v60 = vtrunc.f32 %v4306_v55  ;;  %v4043_v63 = vtrunc.f32 %v4310_v58  ;;  %v219_v11 = vld [vmem:[%s4222_s19 + $0xf0] sm:$0xff]  ;;  %v220_v15 = vld [vmem:[%s4222_s19 + $0xf8] sm:$0xff] }
  0x1b   : > { %3693 = vmatprep.mubr.msk.f32.mxu0 %vm227_vm0, %v195_v20  ;;  %459 = vperm.xlu1 %4075, %v4016_v22   ;;  %v4036_v56 = vcvt.f32.s32 %v4035_v51  ;;  %v4038_v59 = vcvt.f32.s32 %v4037_v54  ;;  %v4045_v2 = vtrunc.f32 %v4314_v61  ;;  %v4047_v5 = vtrunc.f32 %v216_v0 }
  0x1c   : > { %v4040_v62 = vcvt.f32.s32 %v4039_v57  ;;  %v4042_v1 = vcvt.f32.s32 %v4041_v60  ;;  %v4044_v4 = vcvt.f32.s32 %v4043_v63  ;;  %v4049_v10 = vtrunc.f32 %v217_v3 }
  0x1d   : > { %v4046_v7 = vcvt.f32.s32 %v4045_v2  ;;  %v4048_v12 = vcvt.f32.s32 %v4047_v5  ;;  %v4051_v14 = vtrunc.f32 %v218_v6  ;;  %v4053_v18 = vtrunc.f32 %v219_v11 }
  0x1e   : > { %3694 = vmatmul.mubr.msk.f32.gmra.mxu0 %vm227_vm0, %v196_v25  ;;  %605 = vrot.lane.b32.xlu0 %v593_v27, %s4177_s22  ;;  %v4050_v17 = vcvt.f32.s32 %v4049_v10  ;;  %v4055_v20 = vtrunc.f32 %v220_v15  ;;  %v358_v25 = vlaneseq }
  0x1f   : > { %462 = vperm.xlu1 %4075, %v4018_v29   ;;  %v4052_v19 = vcvt.f32.s32 %v4051_v14  ;;  %v4054_v22 = vcvt.f32.s32 %v4053_v18  ;;  %v5537_v29 = vmov 0.0  }
  0x20   : > { %v4056_v23 = vcvt.f32.s32 %v4055_v20  ;;  %v4324_v26 = vand.u32 127, %v358_v25 }
  0x22   : > { %465 = vperm.xlu0 %4074, %v4020_v32  }
  0x23   : > { %468 = vperm.xlu1 %4075, %v4022_v35  }
  0x26   : > { %471 = vperm.xlu0 %4074, %v4024_v38  }
  0x27   : > { %474 = vperm.xlu1 %4075, %v4026_v41  }
  0x2a   : > { %477 = vperm.xlu0 %4074, %v4028_v44  }
  0x2b   : > { %480 = vperm.xlu1 %4075, %v4030_v47  }
  0x2e   : > { %483 = vperm.xlu0 %4074, %v4032_v50  }
  0x2f   : > { %486 = vperm.xlu1 %4075, %v4034_v53  }
  0x32   : > { %489 = vperm.xlu0 %4074, %v4036_v56  }
  0x33   : > { %492 = vperm.xlu1 %4075, %v4038_v59  }
  0x36   : > { %495 = vperm.xlu0 %4074, %v4040_v62  }
  0x37   : > { %498 = vperm.xlu1 %4075, %v4042_v1  }
  0x3a   : > { %501 = vperm.xlu0 %4074, %v4044_v4  }
  0x3b   : > { %504 = vperm.xlu1 %4075, %v4046_v7  }
  0x3e   : > { %507 = vperm.xlu0 %4074, %v4048_v12  }
  0x3f   : > { %510 = vperm.xlu1 %4075, %v4050_v17  }
  0x42   : > { %513 = vperm.xlu0 %4074, %v4052_v19  }
  0x43   : > { %516 = vperm.xlu1 %4075, %v4054_v22  }
  0x46   : > { %519 = vperm.xlu0 %4074, %v4056_v23  }
  0x91   : > { %v451_v27 = vpop.permute.xlu0 %450 }
  0x92   : > { %vm521_vm2 = vcmp.eq.s32.totalorder %v451_v27, %v4324_v26 }
  0x93   : > { %v4328_v30 = vsel %vm521_vm2, 1.0, %v5537_v29 }
  0x94   : > { %3750 = vmatprep.mubr.msk.f32.mxu0 %vm865_vm1, %v4328_v30 }
  0x95   : > { %v4332_v32 = vpop.permute.xlu0 %453 }
  0x96   : > { %vm522_vm3 = vcmp.eq.s32.totalorder %v4332_v32, %v4324_v26 }
  0x99   : > { %v606_v33 = vpop.permute.xlu0 %605 }
  0x9a   : > { %3696 = vmatprep.subr.mxu1 %v606_v33 }
  0x9b   : > { %3697 = vmatpush3.msra.mxu1 %v606_v33 }
  0x9c   : > { %3699 = vmatmul.mubr.msk.f32.vlgmr.msra.gmra.mxu1 %vm227_vm0, %v4233_v8  ;;  %1195 = vmatprep.subr.mxu1 %v5537_v29  ;;  %v3261_v8 = vld [vmem:[%s5535_s2 + $0xa0] ss:$0 sm:$0xff] }
  0x9d   : > { %3701 = vmatprep.mubr.msk.f32.mxu1 %vm227_vm0, %v4236_v9  ;;  %v4381_v9 = vpop.permute.xlu1 %456  ;;  %v466_v50 = vpop.permute.xlu0 %465 }
  0x9e   : > { %vm523_vm5 = vcmp.eq.s32.totalorder %v4381_v9, %v4324_v26  ;;  %vm526_vm8 = vcmp.eq.s32.totalorder %v466_v50, %v4324_v26  ;;  %v4584_v50 = vshrl.u32 %v358_v25, 7 }
  0x9f   : > { %v4449_v4 = vsel %vm523_vm5, 1.0, %v5537_v29  ;;  %v4472_v12 = vsel %vm526_vm8, 1.0, %v5537_v29 }
  0xa0   : > { %3702 = vmatmul.mubr.msk.f32.gmra.mxu1 %vm227_vm0, %v4243_v13  ;;  %5576 = vst [vmem:[#allocation3_spill] sm:$0xff] %v4472_v12 }
  0xa1   : > { %3704 = vmatprep.mubr.msk.f32.mxu1 %vm227_vm0, %v4247_v16  ;;  %v472_v59 = vpop.permute.xlu0 %471 }
  0xa2   : > { %vm528_vm10 = vcmp.eq.s32.totalorder %v472_v59, %v4324_v26 }
  0xa3   : > { %v4484_v18 = vsel %vm528_vm10, 1.0, %v5537_v29 }
  0xa4   : > { %3705 = vmatmul.mubr.msk.f32.gmra.mxu1 %vm227_vm0, %v4254_v21  ;;  %5578 = vst [vmem:[#allocation5_spill] sm:$0xff] %v4484_v18 }
  0xa5   : > { %3707 = vmatprep.mubr.msk.f32.mxu1 %vm227_vm0, %v4258_v24  ;;  %v478_v63 = vpop.permute.xlu0 %477 }
  0xa6   : > { %vm530_vm12 = vcmp.eq.s32.totalorder %v478_v63, %v4324_v26 }
  0xa7   : > { %v4496_v22 = vsel %vm530_vm12, 1.0, %v5537_v29 }
  0xa8   : > { %3708 = vmatmul.mubr.msk.f32.gmra.mxu1 %vm227_vm0, %v4268_v28  ;;  %5580 = vst [vmem:[#allocation7_spill] sm:$0xff] %v4496_v22 }
  0xa9   : > { %3710 = vmatprep.mubr.msk.f32.mxu1 %vm227_vm0, %v4272_v31 }
  0xac   : > { %3711 = vmatmul.mubr.msk.f32.gmra.mxu1 %vm227_vm0, %v4278_v34  ;;  %v4389_v34 = vpop.permute.xlu1 %459 }
  0xad   : > { %3713 = vmatprep.mubr.msk.f32.mxu1 %vm227_vm0, %v4282_v37  ;;  %vm524_vm6 = vcmp.eq.s32.totalorder %v4389_v34, %v4324_v26 }
  0xae   : > { %v4460_v7 = vsel %vm524_vm6, 1.0, %v5537_v29 }
  0xb0   : > { %3714 = vmatmul.mubr.msk.f32.gmra.mxu1 %vm227_vm0, %v4286_v40  ;;  %v463_v44 = vpop.permute.xlu1 %462 }
  0xb1   : > { %3716 = vmatprep.mubr.msk.f32.mxu1 %vm227_vm0, %v4290_v43  ;;  %vm525_vm7 = vcmp.eq.s32.totalorder %v463_v44, %v4324_v26 }
  0xb2   : > { %v4464_v10 = vsel %vm525_vm7, 1.0, %v5537_v29 }
  0xb3   : > { %5575 = vst [vmem:[#allocation2_spill] sm:$0xff] %v4464_v10 }
  0xb4   : > { %3717 = vmatmul.mubr.msk.f32.gmra.mxu1 %vm227_vm0, %v4294_v46  ;;  %v469_v56 = vpop.permute.xlu1 %468 }
  0xb5   : > { %3719 = vmatprep.mubr.msk.f32.mxu1 %vm227_vm0, %v4298_v49  ;;  %vm527_vm9 = vcmp.eq.s32.totalorder %v469_v56, %v4324_v26 }
  0xb8   : > { %3720 = vmatmul.mubr.msk.f32.gmra.mxu1 %vm227_vm0, %v4302_v52  ;;  %v475_v60 = vpop.permute.xlu1 %474 }
  0xb9   : > { %3722 = vmatprep.mubr.msk.f32.mxu1 %vm227_vm0, %v4306_v55  ;;  %vm529_vm11 = vcmp.eq.s32.totalorder %v475_v60, %v4324_v26 }
  0xba   : > { %v4488_v19 = vsel %vm529_vm11, 1.0, %v5537_v29 }
  0xbb   : > { %5579 = vst [vmem:[#allocation6_spill] sm:$0xff] %v4488_v19 }
  0xbc   : > { %3723 = vmatmul.mubr.msk.f32.gmra.mxu1 %vm227_vm0, %v4310_v58  ;;  %v481_v2 = vpop.permute.xlu1 %480 }
  0xbd   : > { %3725 = vmatprep.mubr.msk.f32.mxu1 %vm227_vm0, %v4314_v61  ;;  %vm531_vm13 = vcmp.eq.s32.totalorder %v481_v2, %v4324_v26 }
  0xbe   : > { %v4500_v23 = vsel %vm531_vm13, 1.0, %v5537_v29 }
  0xbf   : > { %5581 = vst [vmem:[#allocation8_spill] sm:$0xff] %v4500_v23 }
  0xc0   : > { %3726 = vmatmul.mubr.msk.f32.gmra.mxu1 %vm227_vm0, %v216_v0 }
  0xc1   : > { %3728 = vmatprep.mubr.msk.f32.mxu1 %vm227_vm0, %v217_v3  ;;  %v4445_v3 = vsel %vm522_vm3, 1.0, %v5537_v29 }
  0xc4   : > { %3729 = vmatmul.mubr.msk.f32.gmra.mxu1 %vm227_vm0, %v218_v6  ;;  %v484_v6 = vpop.permute.xlu0 %483 }
  0xc5   : > { %3731 = vmatprep.mubr.msk.f32.mxu1 %vm227_vm0, %v219_v11  ;;  %v487_v11 = vpop.permute.xlu1 %486  ;;  %vm532_vm14 = vcmp.eq.s32.totalorder %v484_v6, %v4324_v26 }
  0xc6   : > { %vm533_vm15 = vcmp.eq.s32.totalorder %v487_v11, %v4324_v26  ;;  %v4508_v32 = vsel %vm532_vm14, 1.0, %v5537_v29 }
  0xc7   : > { %5582 = vst [vmem:[#allocation9_spill] sm:$0xff] %v4508_v32 }
  0xc8   : > { %3732 = vmatmul.mubr.msk.f32.gmra.mxu1 %vm227_vm0, %v220_v15  ;;  %v490_v14 = vpop.permute.xlu0 %489  ;;  %v4476_v15 = vsel %vm527_vm9, 1.0, %v5537_v29 }
  0xc9   : > { %5577 = vst [vmem:[#allocation4_spill] sm:$0xff] %v4476_v15  ;;  %v493_v17 = vpop.permute.xlu1 %492  ;;  %vm534_vm2 = vcmp.eq.s32.totalorder %v490_v14, %v4324_v26 }
  0xca   : > { %vm535_vm3 = vcmp.eq.s32.totalorder %v493_v17, %v4324_v26 }
  0xcc   : > { %v496_v20 = vpop.permute.xlu0 %495 }
  0xcd   : > { %v499_v27 = vpop.permute.xlu1 %498  ;;  %vm536_vm5 = vcmp.eq.s32.totalorder %v496_v20, %v4324_v26 }
  0xce   : > { %vm537_vm6 = vcmp.eq.s32.totalorder %v499_v27, %v4324_v26 }
  0xcf   : > { %v4536_v34 = vsel %vm537_vm6, 1.0, %v5537_v29 }
  0xd0   : > { %v502_v33 = vpop.permute.xlu0 %501  ;;  %5587 = vst [vmem:[#allocation14_spill] sm:$0xff] %v4536_v34 }
  0xd1   : > { %v505_v9 = vpop.permute.xlu1 %504  ;;  %vm538_vm7 = vcmp.eq.s32.totalorder %v502_v33, %v4324_v26 }
  0xd2   : > { %v3686_v13 = vpop.f32.mrf.mxu0  ;;  %vm539_vm8 = vcmp.eq.s32.totalorder %v505_v9, %v4324_v26 }
  0xd3   : > { %v4383_v16 = vadd.f32 %v3686_v13, %v3261_v8  ;;  %v4520_v13 = vsel %vm534_vm2, 1.0, %v5537_v29 }
  0xd4   : > { %v318_v21 = vpop.f32.mrf.mxu0  ;;  %5584 = vst [vmem:[#allocation11_spill] sm:$0xff] %v4520_v13 }
  0xd5   : > { %v4385_v24 = vadd.f32 %v3261_v8, %v318_v21  ;;  %v1334_v28 = vmul.f32 %v4383_v16, %v4383_v16  ;;  %v4524_v21 = vsel %vm535_vm3, 1.0, %v5537_v29 }
  0xd6   : > { %v3689_v31 = vpop.f32.mrf.mxu0  ;;  %5585 = vst [vmem:[#allocation12_spill] sm:$0xff] %v4524_v21 }
  0xd7   : > { %v4391_v35 = vadd.f32 %v3689_v31, %v3261_v8  ;;  %v1344_v36 = vsel %vm1308_vm4, %v1334_v28, 0.0  ;;  %v1333_v37 = vmul.f32 %v4385_v24, %v4385_v24  ;;  %v508_v28 = vpop.permute.xlu0 %507  ;;  %v4532_v31 = vsel %vm536_vm5, 1.0, %v5537_v29 }
  0xd8   : > { %1345 = vadd.xlane.f32.xlu0 %v1344_v36  ;;  %v328_v38 = vpop.f32.mrf.mxu0  ;;  %5586 = vst [vmem:[#allocation13_spill] sm:$0xff] %v4532_v31  ;;  %v511_v36 = vpop.permute.xlu1 %510  ;;  %vm540_vm9 = vcmp.eq.s32.totalorder %v508_v28, %v4324_v26 }
  0xd9   : > { %v4396_v39 = vadd.f32 %v3261_v8, %v328_v38  ;;  %v1341_v40 = vsel %vm1308_vm4, %v1333_v37, 0.0  ;;  %v1336_v41 = vmul.f32 %v4391_v35, %v4391_v35  ;;  %v4544_v37 = vsel %vm538_vm7, 1.0, %v5537_v29 }
  0xda   : > { %v3692_v42 = vpop.f32.mrf.mxu0  ;;  %1342 = vadd.xlane.f32.xlu1 %v1341_v40  ;;  %5588 = vst [vmem:[#allocation15_spill] sm:$0xff] %v4544_v37  ;;  %v4548_v40 = vsel %vm539_vm8, 1.0, %v5537_v29  ;;  %vm541_vm10 = vcmp.eq.s32.totalorder %v511_v36, %v4324_v26 }
  0xdb   : > { %v4401_v45 = vadd.f32 %v3692_v42, %v3261_v8  ;;  %v1350_v46 = vsel %vm1308_vm4, %v1336_v41, 0.0  ;;  %v1335_v47 = vmul.f32 %v4396_v39, %v4396_v39  ;;  %v514_v38 = vpop.permute.xlu0 %513  ;;  %5589 = vst [vmem:[#allocation16_spill] sm:$0xff] %v4548_v40  ;;  %v4556_v42 = vsel %vm540_vm9, 1.0, %v5537_v29 }
  0xdc   : > { %v338_v43 = vpop.f32.mrf.mxu0  ;;  %v517_v41 = vpop.permute.xlu1 %516  ;;  %5590 = vst [vmem:[#allocation17_spill] sm:$0xff] %v4556_v42  ;;  %vm542_vm11 = vcmp.eq.s32.totalorder %v514_v38, %v4324_v26 }
  0xdd   : > { %v4408_v52 = vadd.f32 %v3261_v8, %v338_v43  ;;  %v1347_v54 = vsel %vm1308_vm4, %v1335_v47, 0.0  ;;  %v1338_v55 = vmul.f32 %v4401_v45, %v4401_v45  ;;  %v4560_v43 = vsel %vm541_vm10, 1.0, %v5537_v29 }
  0xde   : > { %v3695_v48 = vpop.f32.mrf.mxu0  ;;  %1351 = vadd.xlane.f32.xlu1 %v1350_v46  ;;  %5591 = vst [vmem:[#allocation18_spill] sm:$0xff] %v4560_v43  ;;  %vm543_vm12 = vcmp.eq.s32.totalorder %v517_v41, %v4324_v26  ;;  %v4568_v46 = vsel %vm542_vm11, 1.0, %v5537_v29 }
  0xdf   : > { %v4406_v49 = vadd.f32 %v3695_v48, %v3261_v8  ;;  %v1356_v57 = vsel %vm1308_vm4, %v1338_v55, 0.0  ;;  %v1337_v58 = vmul.f32 %v4408_v52, %v4408_v52  ;;  %v520_v44 = vpop.permute.xlu0 %519  ;;  %5592 = vst [vmem:[#allocation19_spill] sm:$0xff] %v4568_v46  ;;  %v4572_v47 = vsel %vm543_vm12, 1.0, %v5537_v29 }
  0xe0   : > { %v348_v51 = vpop.f32.mrf.mxu0  ;;  %vm544_vm13 = vcmp.eq.s32.totalorder %v520_v44, %v4324_v26  ;;  %5593 = vst [vmem:[#allocation20_spill] sm:$0xff] %v4572_v47  ;;  %v373_v26 = vsub.s32 1, %v4584_v50 }
  0xe1   : > { %v4410_v53 = vadd.f32 %v3261_v8, %v348_v51  ;;  %3734 = vmatprep.subr.mxu0 %v4406_v49  ;;  %v1353_v61 = vsel %vm1308_vm4, %v1337_v58, 0.0  ;;  %v1340_v1 = vmul.f32 %v4406_v49, %v4406_v49  ;;  %v4512_v8 = vsel %vm533_vm15, 1.0, %v5537_v29  ;;  %v4594_v51 = vld [vmem:[%s4590_s28] ss:$8 sm:$0x3] }
  0xe2   : > { %3735 = vmatpush3.msra.mxu0 %v4406_v49  ;;  %1348 = vadd.xlane.f32.xlu1 %v1347_v54  ;;  %5583 = vst [vmem:[#allocation10_spill] sm:$0xff] %v4512_v8  ;;  %v4579_v48 = vsel %vm544_vm13, 1.0, %v5537_v29  ;;  %v4597_v54 = vrot.slane %v4594_v51, %v373_v26 }
  0xe3   : > { %3736 = vmatprep.subr.mxu0 %v4410_v53  ;;  %v1339_v62 = vmul.f32 %v4410_v53, %v4410_v53  ;;  %v1362_v5 = vsel %vm1308_vm4, %v1340_v1, 0.0  ;;  %5594 = vst [vmem:[#allocation21_spill] sm:$0xff] %v4579_v48 }
  0xe4   : > { %3737 = vmatpush3.msra.mxu0 %v4410_v53  ;;  %vm376_vm14 = vcmp.eq.s32.totalorder %v4584_v50, %v4597_v54 }
  0xe5   : > { %3738 = vmatprep.subr.mxu0 %v4401_v45  ;;  %v1359_v0 = vsel %vm1308_vm4, %v1339_v62, 0.0  ;;  %v4602_v25 = vsel %vm376_vm14, 1.0, %v5537_v29 }
  0xe6   : > { %3739 = vmatpush3.msra.mxu0 %v4401_v45  ;;  %1357 = vadd.xlane.f32.xlu1 %v1356_v57 }
  0xe7   : > { %3740 = vmatprep.subr.mxu0 %v4408_v52  ;;  %3358 = vmatprep.mubr.msk.f32.mxu1 %vm865_vm1, %v4602_v25 }
  0xe8   : > { %3741 = vmatpush3.msra.mxu0 %v4408_v52 }
  0xe9   : > { %3742 = vmatprep.subr.mxu0 %v4391_v35 }
  0xea   : > { %3743 = vmatpush3.msra.mxu0 %v4391_v35  ;;  %1354 = vadd.xlane.f32.xlu1 %v1353_v61 }
  0xeb   : > { %3744 = vmatprep.subr.mxu0 %v4396_v39 }
  0xec   : > { %3745 = vmatpush3.msra.mxu0 %v4396_v39 }
  0xed   : > { %3746 = vmatprep.subr.mxu0 %v4383_v16 }
  0xee   : > { %3747 = vmatpush3.msra.mxu0 %v4383_v16  ;;  %1360 = vadd.xlane.f32.xlu1 %v1359_v0 }
  0xef   : > { %3748 = vmatprep.subr.mxu0 %v4385_v24 }
  0xf0   : > { %3749 = vmatpush3.msra.mxu0 %v4385_v24 }
  0xf1   : > { %3751 = vmatmul.mubr.msk.f32.vlgmr.msra.gmra.mxu0 %vm865_vm1, %v4445_v3 }
  0xf2   : > { %1363 = vadd.xlane.f32.xlu1 %v1362_v5  ;;  %3753 = vmatprep.mubr.msk.f32.mxu0 %vm865_vm1, %v4449_v4 }
  0xf5   : > { %3754 = vmatmul.mubr.msk.f32.gmra.mxu0 %vm865_vm1, %v4460_v7 }
  0xf6   : > { %3756 = vmatprep.mubr.msk.f32.mxu0 %vm865_vm1, %v4464_v10 }
  0xf9   : > { %3757 = vmatmul.mubr.msk.f32.gmra.mxu0 %vm865_vm1, %v4472_v12 }
  0xfa   : > { %3759 = vmatprep.mubr.msk.f32.mxu0 %vm865_vm1, %v4476_v15 }
  0xfd   : > { %3760 = vmatmul.mubr.msk.f32.gmra.mxu0 %vm865_vm1, %v4484_v18 }
  0xfe   : > { %3762 = vmatprep.mubr.msk.f32.mxu0 %vm865_vm1, %v4488_v19 }
 0x101   : > { %3763 = vmatmul.mubr.msk.f32.gmra.mxu0 %vm865_vm1, %v4496_v22 }
 0x102   : > { %3765 = vmatprep.mubr.msk.f32.mxu0 %vm865_vm1, %v4500_v23 }
 0x105   : > { %3766 = vmatmul.mubr.msk.f32.gmra.mxu0 %vm865_vm1, %v4508_v32 }
 0x106   : > { %3768 = vmatprep.mubr.msk.f32.mxu0 %vm865_vm1, %v4512_v8 }
 0x109   : > { %3769 = vmatmul.mubr.msk.f32.gmra.mxu0 %vm865_vm1, %v4520_v13 }
 0x10a   : > { %3771 = vmatprep.mubr.msk.f32.mxu0 %vm865_vm1, %v4524_v21 }
 0x10d   : > { %3772 = vmatmul.mubr.msk.f32.gmra.mxu0 %vm865_vm1, %v4532_v31 }
 0x10e   : > { %3774 = vmatprep.mubr.msk.f32.mxu0 %vm865_vm1, %v4536_v34 }
 0x111   : > { %3775 = vmatmul.mubr.msk.f32.gmra.mxu0 %vm865_vm1, %v4544_v37 }
 0x112   : > { %3777 = vmatprep.mubr.msk.f32.mxu0 %vm865_vm1, %v4548_v40 }
 0x115   : > { %3778 = vmatmul.mubr.msk.f32.gmra.mxu0 %vm865_vm1, %v4556_v42 }
 0x116   : > { %3780 = vmatprep.mubr.msk.f32.mxu0 %vm865_vm1, %v4560_v43 }
 0x119   : > { %3781 = vmatmul.mubr.msk.f32.gmra.mxu0 %vm865_vm1, %v4568_v46 }
 0x11a   : > { %3783 = vmatprep.mubr.msk.f32.mxu0 %vm865_vm1, %v4572_v47 }
 0x11d   : > { %3784 = vmatmul.mubr.msk.f32.gmra.mxu0 %vm865_vm1, %v4579_v48 }
 0x15c   : > { %v4606_v55 = vpop.f32.mrf.mxu1 }
 0x15e   : > { %v4608_v56 = vpop.f32.mrf.mxu1 }
 0x160   : > { %v4610_v57 = vpop.f32.mrf.mxu1 }
 0x162   : > { %v4612_v58 = vpop.f32.mrf.mxu1 }
 0x164   : > { %v4614_v59 = vpop.f32.mrf.mxu1 }
 0x166   : > { %v4616_v60 = vpop.f32.mrf.mxu1 }
 0x168   : > { %v3709_v61 = vpop.f32.mrf.mxu1 }
 0x16a   : > { %v776_v62 = vpop.f32.mrf.mxu1 }
 0x16c   : > { %v3712_v63 = vpop.f32.mrf.mxu1 }
 0x16e   : > { %v786_v2 = vpop.f32.mrf.mxu1 }
 0x170   : > { %v3715_v11 = vpop.f32.mrf.mxu1 }
 0x172   : > { %v796_v20 = vpop.f32.mrf.mxu1 }
 0x174   : > { %v3718_v9 = vpop.f32.mrf.mxu1 }
 0x176   : > { %v806_v38 = vpop.f32.mrf.mxu1 }
 0x178   : > { %v3721_v26 = vpop.f32.mrf.mxu1 }
 0x17a   : > { %v816_v47 = vpop.f32.mrf.mxu1 }
 0x17c   : > { %v4628_v43 = vpop.f32.mrf.mxu1 }
 0x17e   : > { %v4632_v8 = vpop.f32.mrf.mxu1 }
 0x1b1   : > { %v4618_v0 = vpop.f32.mrf.mxu0 }
 0x1b3   : > { %v4620_v1 = vpop.f32.mrf.mxu0 }
 0x1b5   : > { %v4622_v5 = vpop.f32.mrf.mxu0 }
 0x1b7   : > { %v4624_v6 = vpop.f32.mrf.mxu0 }
 0x1b9   : > { %v3758_v14 = vpop.f32.mrf.mxu0 }
 0x1bb   : > { %v4626_v17 = vpop.f32.mrf.mxu0 }
 0x1bd   : > { %v3761_v27 = vpop.f32.mrf.mxu0 }
 0x1bf   : > { %v1034_v33 = vpop.f32.mrf.mxu0 }
 0x1c1   : > { %v3764_v28 = vpop.f32.mrf.mxu0 }
 0x1c3   : > { %v1044_v36 = vpop.f32.mrf.mxu0 }
 0x1c5   : > { %v3767_v41 = vpop.f32.mrf.mxu0 }
 0x1c6   : > { %v1060_v32 = vadd.f32 %v3767_v41, %v3715_v11 }
 0x1c7   : > { %v1054_v44 = vpop.f32.mrf.mxu0 }
 0x1c8   : > { %v1055_v15 = vadd.f32 %v1054_v44, %v796_v20 }
 0x1c9   : > { %v3770_v29 = vpop.f32.mrf.mxu0 }
 0x1ca   : > { %v1070_v42 = vadd.f32 %v3770_v29, %v3718_v9  ;;  %v4636_v29 = vpop.f32.mrf.mxu1 }
 0x1cb   : > { %v1064_v48 = vpop.f32.mrf.mxu0 }
 0x1cc   : > { %v1065_v34 = vadd.f32 %v1064_v48, %v806_v38  ;;  %v1136_v23 = vmax.f32 %v1070_v42, 0.0  ;;  %v4642_v11 = vpop.f32.mrf.mxu1 }
 0x1cd   : > { %v3773_v46 = vpop.f32.mrf.mxu0 }
 0x1ce   : > { %v1080_v40 = vadd.f32 %v3773_v46, %v3721_v26  ;;  %v1135_v12 = vmax.f32 %v1065_v34, 0.0  ;;  %v1160_v48 = vadd.f32 1e-07, %v1136_v23  ;;  %v1035_v23 = vadd.f32 %v1034_v33, %v776_v62 }
 0x1cf   : > { %v1074_v37 = vpop.f32.mrf.mxu0  ;;  %v1010_v26 = vadd.f32 %v4618_v0, %v4606_v55 }
 0x1d0   : > { %v1138_v31 = vmax.f32 %v1080_v40, 0.0  ;;  %v1075_v21 = vadd.f32 %v1074_v37, %v816_v47  ;;  %v5595_v40 = vmov 0.0   ;;  %v1050_v37 = vadd.f32 %v3764_v28, %v3712_v63  ;;  %v3730_v63 = vpop.f32.mrf.mxu1 }
 0x1d1   : > { %v4630_v13 = vpop.f32.mrf.mxu0  ;;  %v1134_v47 = vmax.f32 %v1060_v32, 0.0  ;;  %v1159_v42 = vadd.f32 1e-07, %v1135_v12  ;;  %v1030_v12 = vadd.f32 %v3758_v14, %v4614_v59  ;;  %v1015_v14 = vadd.f32 %v4624_v6, %v4612_v58 }
 0x1d2   : > { %v1162_v22 = vadd.f32 1e-07, %v1138_v31  ;;  %v1137_v19 = vmax.f32 %v1075_v21, 0.0  ;;  %v1045_v31 = vadd.f32 %v1044_v36, %v786_v2  ;;  %v1133_v21 = vmax.f32 %v1055_v15, 0.0  ;;  %v846_v62 = vpop.f32.mrf.mxu1 }
 0x1d3   : > { %v4634_v18 = vpop.f32.mrf.mxu0  ;;  %v1132_v34 = vmax.f32 %v1050_v37, 0.0  ;;  %v1158_v20 = vadd.f32 1e-07, %v1134_v47  ;;  %v1020_v36 = vadd.f32 %v4622_v5, %v4610_v57  ;;  %v1128_v38 = vmax.f32 %v1030_v12, 0.0 }
 0x1d4   : > { %v1161_v10 = vadd.f32 1e-07, %v1137_v19  ;;  %1196 = vmatpush1.msra.mxu1 %v1162_v22  ;;  %v1040_v22 = vadd.f32 %v3761_v27, %v3709_v61  ;;  %v1157_v32 = vadd.f32 1e-07, %v1133_v21  ;;  %v1025_v61 = vadd.f32 %v4626_v17, %v4616_v60  ;;  %v3733_v17 = vpop.f32.mrf.mxu1 }
 0x1d5   : > { %v4638_v46 = vpop.f32.mrf.mxu0  ;;  %1197 = vmatprep.subr.mxu1 %v5595_v40  ;;  %v1156_v9 = vadd.f32 1e-07, %v1132_v34  ;;  %v1129_v27 = vmax.f32 %v1035_v23, 0.0  ;;  %v1126_v37 = vmax.f32 %v1020_v36, 0.0  ;;  %v1152_v57 = vadd.f32 1e-07, %v1128_v38 }
 0x1d6   : > { %1198 = vmatpush1.msra.mxu1 %v1161_v10  ;;  %v1131_v10 = vmax.f32 %v1045_v31, 0.0  ;;  %v1130_v2 = vmax.f32 %v1040_v22, 0.0  ;;  %v1127_v41 = vmax.f32 %v1025_v61, 0.0  ;;  %v1005_v5 = vadd.f32 %v4620_v1, %v4608_v56  ;;  %v856_v6 = vpop.f32.mrf.mxu1 }
 0x1d7   : > { %1199 = vmatprep.subr.mxu1 %v5595_v40  ;;  %v4644_v19 = vpop.f32.mrf.mxu0  ;;  %v1153_v60 = vadd.f32 1e-07, %v1129_v27  ;;  %v1125_v47 = vmax.f32 %v1015_v14, 0.0  ;;  %v1124_v31 = vmax.f32 %v1010_v26, 0.0  ;;  %v1150_v21 = vadd.f32 1e-07, %v1126_v37 }
 0x1d8   : > { %1200 = vmatpush1.msra.mxu1 %v1160_v48  ;;  %v1155_v28 = vadd.f32 1e-07, %v1131_v10  ;;  %v1154_v59 = vadd.f32 1e-07, %v1130_v2  ;;  %v1151_v58 = vadd.f32 1e-07, %v1127_v41  ;;  %v1090_v61 = vadd.f32 %v4630_v13, %v4628_v43 }
 0x1d9   : > { %1201 = vmatprep.subr.mxu1 %v5595_v40  ;;  %v3782_v15 = vpop.f32.mrf.mxu0  ;;  %v1123_v55 = vmax.f32 %v1005_v5, 0.0  ;;  %v1149_v0 = vadd.f32 1e-07, %v1125_v47  ;;  %v1148_v56 = vadd.f32 1e-07, %v1124_v31  ;;  %v4684_v13 = vadd.s32 8, %v4584_v50 }
 0x1da   : > { %1202 = vmatpush1.msra.mxu1 %v1159_v42  ;;  %v1110_v1 = vadd.f32 %v3782_v15, %v3730_v63  ;;  %v1095_v63 = vadd.f32 %v4644_v19, %v4642_v11  ;;  %v369_v11 = vsub.s32 0, %v4584_v50  ;;  %v1140_v19 = vmax.f32 %v1090_v61, 0.0 }
 0x1db   : > { %1203 = vmatprep.subr.mxu1 %v5595_v40  ;;  %v1104_v33 = vpop.f32.mrf.mxu0  ;;  %vm378_vm15 = vcmp.eq.s32.totalorder %v4684_v13, %v4597_v54  ;;  %v4694_v38 = vadd.s32 16, %v4584_v50  ;;  %v4706_v14 = vadd.s32 24, %v4584_v50  ;;  %v5559_v41 = vmov 1.0  }
 0x1dc   : > { %1204 = vmatpush1.msra.mxu1 %v1158_v20  ;;  %v1147_v20 = vadd.f32 1e-07, %v1123_v55  ;;  %v1105_v23 = vadd.f32 %v1104_v33, %v846_v62  ;;  %v1144_v12 = vmax.f32 %v1110_v1, 0.0  ;;  %v4738_v26 = vadd.s32 40, %v4584_v50 }
 0x1dd   : > { %1205 = vmatprep.subr.mxu1 %v5595_v40  ;;  %v3785_v44 = vpop.f32.mrf.mxu0  ;;  %vm380_vm3 = vcmp.eq.s32.totalorder %v4694_v38, %v4597_v54  ;;  %vm382_vm6 = vcmp.eq.s32.totalorder %v4706_v14, %v4597_v54  ;;  %v4770_v47 = vadd.s32 56, %v4584_v50 }
 0x1de   : > { %1206 = vmatpush1.msra.mxu1 %v1157_v32  ;;  %v1120_v42 = vadd.f32 %v3785_v44, %v3733_v17  ;;  %v1100_v32 = vadd.f32 %v4638_v46, %v4636_v29  ;;  %v1143_v15 = vmax.f32 %v1105_v23, 0.0  ;;  %v1085_v29 = vadd.f32 %v4634_v18, %v4632_v8 }
 0x1df   : > { %1207 = vmatprep.subr.mxu1 %v5595_v40  ;;  %v1114_v48 = vpop.f32.mrf.mxu0  ;;  %v1141_v46 = vmax.f32 %v1095_v63, 0.0  ;;  %v4688_v18 = vrot.slane %v4594_v51, %v369_v11  ;;  %v1164_v8 = vadd.f32 1e-07, %v1140_v19  ;;  %v4701_v51 = vsel %vm378_vm15, 1.0, %v5595_v40  ;;  %5596 = vst [vmem:[#allocation22_spill] sm:$0xff] %v4770_v47 }
 0x1e0   : > { %1208 = vmatpush1.msra.mxu1 %v1156_v9  ;;  %v1115_v22 = vadd.f32 %v1114_v48, %v856_v6  ;;  %v1146_v34 = vmax.f32 %v1120_v42, 0.0  ;;  %v1142_v27 = vmax.f32 %v1100_v32, 0.0  ;;  %v1167_v62 = vadd.f32 1e-07, %v1143_v15 }
 0x1e1   : > { %1209 = vmatprep.subr.mxu1 %v5595_v40  ;;  %v1139_v43 = vmax.f32 %v1085_v29, 0.0  ;;  %v1165_v36 = vadd.f32 1e-07, %v1141_v46  ;;  %vm375_vm2 = vcmp.eq.s32.totalorder %v4584_v50, %v4688_v18  ;;  %vm377_vm5 = vcmp.eq.s32.totalorder %v4684_v13, %v4688_v18 }
 0x1e2   : > { %1210 = vmatpush1.msra.mxu1 %v1155_v28  ;;  %v1145_v10 = vmax.f32 %v1115_v22, 0.0  ;;  %v1170_v2 = vadd.f32 1e-07, %v1146_v34  ;;  %v1168_v28 = vadd.f32 1e-07, %v1144_v12  ;;  %v4722_v17 = vadd.s32 32, %v4584_v50 }
 0x1e3   : > { %1211 = vmatprep.subr.mxu1 %v5595_v40  ;;  %v1166_v33 = vadd.f32 1e-07, %v1142_v27  ;;  %vm379_vm7 = vcmp.eq.s32.totalorder %v4694_v38, %v4688_v18  ;;  %v4733_v44 = vsel %vm382_vm6, 1.0, %v5595_v40  ;;  %vm381_vm9 = vcmp.eq.s32.totalorder %v4706_v14, %v4688_v18 }
 0x1e4   : > { %1212 = vmatpush1.msra.mxu1 %v1154_v59  ;;  %v1169_v9 = vadd.f32 1e-07, %v1145_v10  ;;  %v1163_v59 = vadd.f32 1e-07, %v1139_v43  ;;  %vm384_vm8 = vcmp.eq.s32.totalorder %v4722_v17, %v4597_v54  ;;  %vm386_vm10 = vcmp.eq.s32.totalorder %v4738_v26, %v4597_v54 }
 0x1e5   : > { %1213 = vmatprep.subr.mxu1 %v5595_v40  ;;  %v4749_v37 = vsel %vm384_vm8, 1.0, %v5595_v40  ;;  %vm383_vm11 = vcmp.eq.s32.totalorder %v4722_v17, %v4688_v18  ;;  %v4765_v5 = vsel %vm386_vm10, 1.0, %v5595_v40  ;;  %vm385_vm13 = vcmp.eq.s32.totalorder %v4738_v26, %v4688_v18 }
 0x1e6   : > { %1214 = vmatpush1.msra.mxu1 %v1153_v60  ;;  %v4717_v60 = vsel %vm380_vm3, 1.0, %v5595_v40  ;;  %vm390_vm14 = vcmp.eq.s32.totalorder %v4770_v47, %v4597_v54  ;;  %vm389_vm3 = vcmp.eq.s32.totalorder %v4770_v47, %v4688_v18 }
 0x1e7   : > { %1215 = vmatprep.subr.mxu1 %v5595_v40  ;;  %v4794_v6 = vsel %vm390_vm14, 1.0, %v5595_v40 }
 0x1e8   : > { %1216 = vmatpush1.msra.mxu1 %v1152_v57  ;;  %v4754_v57 = vadd.s32 48, %v4584_v50 }
 0x1e9   : > { %1217 = vmatprep.subr.mxu1 %v5595_v40 }
 0x1ea   : > { %1218 = vmatpush1.msra.mxu1 %v1151_v58  ;;  %vm388_vm12 = vcmp.eq.s32.totalorder %v4754_v57, %v4597_v54  ;;  %vm387_vm15 = vcmp.eq.s32.totalorder %v4754_v57, %v4688_v18  ;;  %v4142_v54 = vld [vmem:[%s4222_s19 + $0x40] sm:$0xff] }
 0x1eb   : > { %1219 = vmatprep.subr.mxu1 %v5595_v40  ;;  %v4781_v58 = vsel %vm388_vm12, 1.0, %v5595_v40 }
 0x1ec   : > { %1220 = vmatpush1.msra.mxu1 %v1150_v21 }
 0x1ed   : > { %1221 = vmatprep.subr.mxu1 %v5595_v40 }
 0x1ee   : > { %1222 = vmatpush1.msra.mxu1 %v1149_v0 }
 0x1ef   : > { %1223 = vmatprep.subr.mxu1 %v5595_v40 }
 0x1f0   : > { %1224 = vmatpush1.msra.mxu1 %v1148_v56 }
 0x1f1   : > { %1225 = vmatprep.subr.mxu1 %v5595_v40 }
 0x1f2   : > { %1226 = vmatpush1.msra.mxu1 %v1147_v20 }
 0x1f3   : > { %1243 = vmatprep.subr.mxu1 %v5595_v40 }
 0x1f4   : > { %1244 = vmatpush2.msra.mxu1 %v1170_v2 }
 0x1f5   : > { %1245 = vmatprep.subr.mxu1 %v5595_v40 }
 0x1f6   : > { %1246 = vmatpush2.msra.mxu1 %v1169_v9 }
 0x1f7   : > { %1247 = vmatprep.subr.mxu1 %v5595_v40 }
 0x1f8   : > { %1248 = vmatpush2.msra.mxu1 %v1168_v28 }
 0x1f9   : > { %1249 = vmatprep.subr.mxu1 %v5595_v40 }
 0x1fa   : > { %1250 = vmatpush2.msra.mxu1 %v1167_v62 }
 0x1fb   : > { %1251 = vmatprep.subr.mxu1 %v5595_v40 }
 0x1fc   : > { %1252 = vmatpush2.msra.mxu1 %v1166_v33 }
 0x1fd   : > { %1253 = vmatprep.subr.mxu1 %v5595_v40 }
 0x1fe   : > { %1254 = vmatpush2.msra.mxu1 %v1165_v36 }
 0x1ff   : > { %1255 = vmatprep.subr.mxu1 %v5595_v40 }
 0x200   : > { %1256 = vmatpush2.msra.mxu1 %v1164_v8 }
 0x201   : > { %1257 = vmatprep.subr.mxu1 %v5595_v40 }
 0x202   : > { %1258 = vmatpush2.msra.mxu1 %v1163_v59 }
 0x203   : > { %3359 = vmatmul.mubr.msk.f32.vlgmr.msra.gmra.mxu1 %vm375_vm2, %v5559_v41 }
 0x204   : > { %3360 = vmatprep.mubr.msk.f32.mxu1 %vm865_vm1, %v4701_v51 }
 0x207   : > { %3361 = vmatmul.mubr.msk.f32.gmra.mxu1 %vm377_vm5, %v5559_v41 }
 0x208   : > { %3362 = vmatprep.mubr.msk.f32.mxu1 %vm865_vm1, %v4717_v60 }
 0x20b   : > { %3363 = vmatmul.mubr.msk.f32.gmra.mxu1 %vm379_vm7, %v5559_v41 }
 0x20c   : > { %3364 = vmatprep.mubr.msk.f32.mxu1 %vm865_vm1, %v4733_v44 }
 0x20f   : > { %3365 = vmatmul.mubr.msk.f32.gmra.mxu1 %vm381_vm9, %v5559_v41 }
 0x210   : > { %3366 = vmatprep.mubr.msk.f32.mxu1 %vm865_vm1, %v4749_v37 }
 0x213   : > { %3367 = vmatmul.mubr.msk.f32.gmra.mxu1 %vm383_vm11, %v5559_v41 }
 0x214   : > { %3368 = vmatprep.mubr.msk.f32.mxu1 %vm865_vm1, %v4765_v5 }
 0x217   : > { %3369 = vmatmul.mubr.msk.f32.gmra.mxu1 %vm385_vm13, %v5559_v41 }
 0x218   : > { %3370 = vmatprep.mubr.msk.f32.mxu1 %vm865_vm1, %v4781_v58 }
 0x21b   : > { %3371 = vmatmul.mubr.msk.f32.gmra.mxu1 %vm387_vm15, %v5559_v41 }
 0x21c   : > { %3372 = vmatprep.mubr.msk.f32.mxu1 %vm865_vm1, %v4794_v6 }
 0x21f   : > { %3373 = vmatmul.mubr.msk.f32.gmra.mxu1 %vm389_vm3, %v5559_v41 }
 0x220   : > { %3836 = vmatprep.mubr.msk.f32.mxu1 %vm227_vm0, %v4142_v54  ;;  %v4180_v54 = vmov 0  }
 0x221   : > { %4076 = vset.pattern.permute.xlu0 %v4180_v54  ;;  %4077 = vset.pattern.permute.xlu1 %v4180_v54 }
 0x2c3   : > { %v4810_v48 = vpop.f32.mrf.mxu1 }
 0x2c4   : > { %v1300_v31 = vmul.f32 %v4810_v48, %v4810_v48 }
 0x2c5   : > { %v1263_v21 = vpop.f32.mrf.mxu1 }
 0x2c6   : > { %v1309_v42 = vsel %vm1308_vm4, %v1300_v31, 0.0  ;;  %v4853_v31 = vld [vmem:[%s5535_s2 + $0x18] sm:$0xff]  ;;  %v1343_v21 = vpop.xlane.xlu1 %1342 }
 0x2c7   : > { %1310 = vadd.xlane.f32.xlu0 %v1309_v42  ;;  %v4815_v55 = vpop.f32.mrf.mxu1  ;;  %3786 = vmatprep.subr.mxu0 %v4853_v31  ;;  %4078 = vrsqrt.f32 %v1343_v21  ;;  %vm1367_vm6 = vcmp.eq.f32.partialorder %v1343_v21, inf  ;;  %vm1369_vm8 = vcmp.eq.f32.partialorder %v1343_v21, 0.0 }
 0x2c8   : > { %v1301_v0 = vmul.f32 %v4815_v55, %v4815_v55  ;;  %3787 = vmatpush3.msra.mxu0 %v4853_v31 }
 0x2c9   : > { %v1268_v22 = vpop.f32.mrf.mxu1 }
 0x2ca   : > { %v1312_v56 = vsel %vm1308_vm4, %v1301_v0, 0.0  ;;  %v4857_v42 = vpop.xlane.xlu1 %1351  ;;  %v1346_v0 = vpop.xlane.xlu0 %1345 }
 0x2cb   : > { %1313 = vadd.xlane.f32.xlu0 %v1312_v56  ;;  %v4820_v1 = vpop.f32.mrf.mxu1  ;;  %4080 = vrsqrt.f32 %v1346_v0  ;;  %vm1374_vm10 = vcmp.eq.f32.partialorder %v1346_v0, inf  ;;  %vm1376_vm12 = vcmp.eq.f32.partialorder %v1346_v0, 0.0 }
 0x2cc   : > { %v1302_v34 = vmul.f32 %v4820_v1, %v4820_v1 }
 0x2cd   : > { %v1273_v20 = vpop.f32.mrf.mxu1 }
 0x2ce   : > { %v1315_v23 = vsel %vm1308_vm4, %v1302_v34, 0.0  ;;  %v4859_v22 = vpop.xlane.xlu1 %1348 }
 0x2cf   : > { %1316 = vadd.xlane.f32.xlu0 %v1315_v23  ;;  %v4825_v10 = vpop.f32.mrf.mxu1  ;;  %4082 = vrsqrt.f32 %v4859_v22  ;;  %vm1381_vm14 = vcmp.eq.f32.partialorder %v4859_v22, inf }
 0x2d0   : > { %v1303_v32 = vmul.f32 %v4825_v10, %v4825_v10  ;;  %4084 = vrsqrt.f32 %v4857_v42 }
 0x2d1   : > { %v1278_v12 = vpop.f32.mrf.mxu1 }
 0x2d2   : > { %v1318_v2 = vsel %vm1308_vm4, %v1303_v32, 0.0  ;;  %v4861_v56 = vpop.xlane.xlu1 %1357 }
 0x2d3   : > { %1319 = vadd.xlane.f32.xlu0 %v1318_v2  ;;  %v4830_v63 = vpop.f32.mrf.mxu1 }
 0x2d4   : > { %v1304_v15 = vmul.f32 %v4830_v63, %v4830_v63  ;;  %v4079_v23 = vpop.eup %4078 }
 0x2d5   : > { %v1283_v9 = vpop.f32.mrf.mxu1  ;;  %v1366_v2 = vmul.f32 %v4079_v23, %v1343_v21 }
 0x2d6   : > { %v1321_v61 = vsel %vm1308_vm4, %v1304_v15, 0.0  ;;  %v4865_v32 = vpop.xlane.xlu1 %1354 }
 0x2d7   : > { %1322 = vadd.xlane.f32.xlu0 %v1321_v61  ;;  %v4835_v27 = vpop.f32.mrf.mxu1 }
 0x2d8   : > { %v1305_v28 = vmul.f32 %v4835_v27, %v4835_v27  ;;  %v4081_v9 = vpop.eup %4080 }
 0x2d9   : > { %v1288_v29 = vpop.f32.mrf.mxu1 }
 0x2da   : > { %v1324_v46 = vsel %vm1308_vm4, %v1305_v28, 0.0  ;;  %v4868_v61 = vpop.xlane.xlu1 %1360  ;;  %v1373_v29 = vmul.f32 %v4081_v9, %v1346_v0 }
 0x2db   : > { %1325 = vadd.xlane.f32.xlu0 %v1324_v46  ;;  %v4840_v62 = vpop.f32.mrf.mxu1 }
 0x2dc   : > { %v1306_v11 = vmul.f32 %v4840_v62, %v4840_v62 }
 0x2dd   : > { %v1293_v19 = vpop.f32.mrf.mxu1 }
 0x2de   : > { %v1327_v33 = vsel %vm1308_vm4, %v1306_v11, 0.0  ;;  %v1368_v11 = vsel %vm1367_vm6, %v1343_v21, %v1366_v2  ;;  %v4083_v19 = vpop.eup %4082  ;;  %v4873_v23 = vpop.xlane.xlu1 %1363  ;;  %v1377_v2 = vand.u32 2147483648, %v1346_v0  ;;  %vm1383_vm6 = vcmp.eq.f32.partialorder %v4859_v22, 0.0 }
 0x2df   : > { %1328 = vadd.xlane.f32.xlu0 %v1327_v33  ;;  %v4845_v43 = vpop.f32.mrf.mxu1  ;;  %v1370_v33 = vand.u32 2147483648, %v1343_v21  ;;  %v1380_v54 = vmul.f32 %v4083_v19, %v4859_v22 }
 0x2e0   : > { %v1307_v36 = vmul.f32 %v4845_v43, %v4845_v43 }
 0x2e1   : > { %v1298_v8 = vpop.f32.mrf.mxu1  ;;  %v1382_v19 = vsel %vm1381_vm14, %v4859_v22, %v1380_v54  ;;  %vm1397_vm14 = vcmp.eq.f32.partialorder %v4865_v32, 0.0 }
 0x2e2   : > { %v1330_v59 = vsel %vm1308_vm4, %v1307_v36, 0.0  ;;  %v1371_v8 = vsel %vm1369_vm8, %v1370_v33, %v1368_v11  ;;  %v4888_v33 = vld [vmem:[%s5535_s2 + $0x10] sm:$0xff]  ;;  %vm1388_vm8 = vcmp.eq.f32.partialorder %v4857_v42, inf }
 0x2e3   : > { %1331 = vadd.xlane.f32.xlu1 %v1330_v59  ;;  %v4085_v59 = vpop.eup %4084  ;;  %3788 = vmatprep.subr.mxu0 %v4888_v33 }
 0x2e4   : > { %v1387_v9 = vmul.f32 %v4085_v59, %v4857_v42  ;;  %3789 = vmatpush3.msra.mxu0 %v4888_v33  ;;  %v4898_v59 = vld [vmem:[%s5535_s2 + $0x8] sm:$0xff] }
 0x2e5   : > { %3790 = vmatprep.subr.mxu0 %v4898_v59 }
 0x2e6   : > { %3791 = vmatpush3.msra.mxu0 %v4898_v59 }
 0x350   : > { %v1311_v34 = vpop.xlane.xlu0 %1310 }
 0x351   : > { %v1433_v20 = vmax.f32 %v1311_v34, 1e-24 }
 0x353   : > { %4086 = vrsqrt.f32 %v1433_v20  ;;  %v1375_v20 = vsel %vm1374_vm10, %v1346_v0, %v1373_v29  ;;  %v1384_v0 = vand.u32 2147483648, %v4859_v22  ;;  %v1389_v22 = vsel %vm1388_vm8, %v4857_v42, %v1387_v9 }
 0x354   : > { %v1314_v12 = vpop.xlane.xlu0 %1313  ;;  %4088 = vrsqrt.f32 %v4865_v32  ;;  %vm1390_vm10 = vcmp.eq.f32.partialorder %v4857_v42, 0.0  ;;  %vm1404_vm8 = vcmp.eq.f32.partialorder %v4861_v56, 0.0 }
 0x355   : > { %v1434_v15 = vmax.f32 %v1314_v12, 1e-24  ;;  %v4878_v12 = vld [vmem:[%s5535_s2 + $0x22] ss:$0 sm:$0xff] }
 0x356   : > { %v1425_v21 = vmul.f32 %v4878_v12, %v1371_v8 }
 0x357   : > { %4090 = vrsqrt.f32 %v1434_v15 }
 0x358   : > { %v1317_v28 = vpop.xlane.xlu0 %1316  ;;  %4092 = vrsqrt.f32 %v4861_v56 }
 0x359   : > { %v1435_v46 = vmax.f32 %v1317_v28, 1e-24 }
 0x35b   : > { %4094 = vrsqrt.f32 %v1435_v46  ;;  %v1378_v46 = vsel %vm1376_vm12, %v1377_v2, %v1375_v20  ;;  %v1385_v20 = vsel %vm1383_vm6, %v1384_v0, %v1382_v19  ;;  %vm1395_vm12 = vcmp.eq.f32.partialorder %v4865_v32, inf }
 0x35c   : > { %v1320_v36 = vpop.xlane.xlu0 %1319  ;;  %4096 = vrsqrt.f32 %v4868_v61  ;;  %v1426_v8 = vmul.f32 %v4878_v12, %v1378_v46  ;;  %v1391_v46 = vand.u32 2147483648, %v4857_v42  ;;  %vm1402_vm6 = vcmp.eq.f32.partialorder %v4861_v56, inf }
 0x35d   : > { %v1436_v34 = vmax.f32 %v1320_v36, 1e-24 }
 0x35f   : > { %4098 = vrsqrt.f32 %v1436_v34 }
 0x360   : > { %v4087_v15 = vpop.eup %4086  ;;  %v1323_v28 = vpop.xlane.xlu0 %1322  ;;  %4100 = vrsqrt.f32 %v4873_v23 }
 0x361   : > { %v1437_v29 = vmax.f32 %v1323_v28, 1e-24  ;;  %v1449_v11 = vmul.f32 %v4087_v15, %v1425_v21  ;;  %v4089_v36 = vpop.eup %4088 }
 0x362   : > { %v1394_v2 = vmul.f32 %v4089_v36, %v4865_v32  ;;  %v1392_v36 = vsel %vm1390_vm10, %v1391_v46, %v1389_v22  ;;  %vm1409_vm10 = vcmp.eq.f32.partialorder %v4868_v61, inf }
 0x363   : > { %4102 = vrsqrt.f32 %v1437_v29  ;;  %1459 = vperm.xlu0 %4076, %v1449_v11   ;;  %v4909_v29 = vld [vmem:[%s5535_s2] sm:$0xff]  ;;  %v1427_v11 = vmul.f32 %v4878_v12, %v1385_v20  ;;  %v1428_v42 = vmul.f32 %v4878_v12, %v1392_v36 }
 0x364   : > { %v4091_v54 = vpop.eup %4090  ;;  %v1326_v34 = vpop.xlane.xlu0 %1325  ;;  %3792 = vmatprep.subr.mxu0 %v4909_v29 }
 0x365   : > { %v1438_v21 = vmax.f32 %v1326_v34, 1e-24  ;;  %v1450_v15 = vmul.f32 %v4091_v54, %v1426_v8  ;;  %v4093_v28 = vpop.eup %4092  ;;  %3793 = vmatpush3.msra.mxu0 %v4909_v29  ;;  %v1396_v34 = vsel %vm1395_vm12, %v4865_v32, %v1394_v2  ;;  %vm1411_vm12 = vcmp.eq.f32.partialorder %v4868_v61, 0.0 }
 0x366   : > { %v1401_v0 = vmul.f32 %v4093_v28, %v4861_v56 }
 0x367   : > { %4104 = vrsqrt.f32 %v1438_v21  ;;  %1464 = vperm.xlu1 %4077, %v1450_v15   ;;  %v1398_v21 = vand.u32 2147483648, %v4865_v32 }
 0x368   : > { %v4095_v9 = vpop.eup %4094  ;;  %v1329_v19 = vpop.xlane.xlu0 %1328  ;;  %v1403_v2 = vsel %vm1402_vm6, %v4861_v56, %v1401_v0  ;;  %v1412_v0 = vand.u32 2147483648, %v4868_v61  ;;  %vm1418_vm6 = vcmp.eq.f32.partialorder %v4873_v23, 0.0 }
 0x369   : > { %v1439_v8 = vmax.f32 %v1329_v19, 1e-24  ;;  %v1451_v54 = vmul.f32 %v4095_v9, %v1427_v11  ;;  %v4097_v41 = vpop.eup %4096  ;;  %v1399_v22 = vsel %vm1397_vm14, %v1398_v21, %v1396_v34  ;;  %v1405_v19 = vand.u32 2147483648, %v4861_v56 }
 0x36a   : > { %v1408_v28 = vmul.f32 %v4097_v41, %v4868_v61  ;;  %v1429_v36 = vmul.f32 %v4878_v12, %v1399_v22  ;;  %vm1416_vm14 = vcmp.eq.f32.partialorder %v4873_v23, inf  ;;  %v1419_v22 = vand.u32 2147483648, %v4873_v23 }
 0x36b   : > { %4106 = vrsqrt.f32 %v1439_v8  ;;  %1469 = vperm.xlu1 %4077, %v1451_v54   ;;  %v1406_v8 = vsel %vm1404_vm8, %v1405_v19, %v1403_v2 }
 0x36c   : > { %v4099_v20 = vpop.eup %4098  ;;  %v1332_v15 = vpop.xlane.xlu1 %1331  ;;  %v1410_v34 = vsel %vm1409_vm10, %v4868_v61, %v1408_v28  ;;  %v1430_v21 = vmul.f32 %v4878_v12, %v1406_v8 }
 0x36d   : > { %v1440_v46 = vmax.f32 %v1332_v15, 1e-24  ;;  %v1452_v11 = vmul.f32 %v4099_v20, %v1428_v42  ;;  %v4101_v9 = vpop.eup %4100  ;;  %v1413_v20 = vsel %vm1411_vm12, %v1412_v0, %v1410_v34 }
 0x36e   : > { %v1415_v54 = vmul.f32 %v4101_v9, %v4873_v23 }
 0x36f   : > { %4108 = vrsqrt.f32 %v1440_v46  ;;  %1474 = vperm.xlu1 %4077, %v1452_v11   ;;  %v1431_v46 = vmul.f32 %v4878_v12, %v1413_v20 }
 0x370   : > { %v4103_v32 = vpop.eup %4102  ;;  %v1417_v15 = vsel %vm1416_vm14, %v4873_v23, %v1415_v54  ;;  %v597_v23 = vld [vmem:[%s5535_s2 + $0x20] sm:$0xff] }
 0x371   : > { %v1453_v41 = vmul.f32 %v4103_v32, %v1429_v36  ;;  %v1420_v11 = vsel %vm1418_vm6, %v1419_v22, %v1417_v15  ;;  %v599_v36 = vld [vmem:[%s5535_s2 + $0x30] sm:$0xff]  ;;  %v600_v32 = vld [vmem:[%s5535_s2 + $0x38] sm:$0xff] }
 0x372   : > { %v1432_v61 = vmul.f32 %v4878_v12, %v1420_v11  ;;  %1677 = vrot.lane.b32.xlu0 %v599_v36, %s4181_s18  ;;  %v598_v12 = vld [vmem:[%s5535_s2 + $0x28] sm:$0xff]  ;;  %v3375_v11 = vld [vmem:[%s5535_s2 + $0x20] ss:$0 sm:$0xff] }
 0x373   : > { %1479 = vperm.xlu1 %4077, %v1453_v41  }
 0x374   : > { %v4105_v42 = vpop.eup %4104 }
 0x375   : > { %v1454_v56 = vmul.f32 %v4105_v42, %v1430_v21 }
 0x376   : > { %1673 = vrot.lane.b32.xlu0 %v597_v23, %s4181_s18 }
 0x377   : > { %1484 = vperm.xlu1 %4077, %v1454_v56  }
 0x378   : > { %v4107_v28 = vpop.eup %4106 }
 0x379   : > { %v1455_v2 = vmul.f32 %v4107_v28, %v1431_v46  ;;  %v4990_v28 = vld [vmem:[%s5535_s2 + $0x40] sm:$0xff] }
 0x37a   : > { %1669 = vrot.lane.b32.xlu0 %v4888_v33, %s4181_s18  ;;  %5597 = vst [vmem:[#allocation23_spill] sm:$0xff] %v4990_v28 }
 0x37b   : > { %1489 = vperm.xlu1 %4077, %v1455_v2  }
 0x37c   : > { %v4109_v9 = vpop.eup %4108 }
 0x37d   : > { %v1456_v19 = vmul.f32 %v4109_v9, %v1432_v61 }
 0x37e   : > { %1665 = vrot.lane.b32.xlu0 %v4909_v29, %s4181_s18 }
 0x37f   : > { %1494 = vperm.xlu1 %4077, %v1456_v19  }
 0x383   : > { %1679 = vrot.lane.b32.xlu1 %v600_v32, %s4181_s18 }
 0x387   : > { %1675 = vrot.lane.b32.xlu1 %v598_v12, %s4181_s18 }
 0x38b   : > { %1671 = vrot.lane.b32.xlu1 %v4853_v31, %s4181_s18 }
 0x38f   : > { %1667 = vrot.lane.b32.xlu1 %v4898_v59, %s4181_s18 }
 0x393   : > { %1854 = vrot.lane.b32.xlu1 %v4990_v28, %s4177_s22 }
 0x3de   : > { %v1460_v8 = vpop.permute.xlu0 %1459 }
 0x3df   : > { %v1497_v54 = vmul.f32 %v1460_v8, %v4810_v48 }
 0x3e1   : > { %v1505_v41 = vadd.f32 %v1497_v54, %v4385_v24 }
 0x3e2   : > { %v1465_v34 = vpop.permute.xlu1 %1464 }
 0x3e3   : > { %v1498_v0 = vmul.f32 %v1465_v34, %v4815_v55  ;;  %3794 = vmatprep.mubr.msk.f32.mxu0 %vm1308_vm4, %v1505_v41 }
 0x3e5   : > { %v1506_v33 = vadd.f32 %v1498_v0, %v4383_v16 }
 0x3e6   : > { %v1470_v21 = vpop.permute.xlu1 %1469 }
 0x3e7   : > { %v1499_v31 = vmul.f32 %v1470_v21, %v4820_v1  ;;  %3795 = vmatmul.mubr.msk.f32.vlgmr.msra.gmra.mxu0 %vm1308_vm4, %v1506_v33 }
 0x3e9   : > { %v1507_v29 = vadd.f32 %v1499_v31, %v4396_v39 }
 0x3ea   : > { %v1475_v59 = vpop.permute.xlu1 %1474 }
 0x3eb   : > { %v1500_v42 = vmul.f32 %v1475_v59, %v4825_v10  ;;  %3797 = vmatprep.mubr.msk.f32.mxu0 %vm1308_vm4, %v1507_v29 }
 0x3ed   : > { %v1508_v24 = vadd.f32 %v1500_v42, %v4391_v35 }
 0x3ee   : > { %v1480_v48 = vpop.permute.xlu1 %1479 }
 0x3ef   : > { %v1501_v55 = vmul.f32 %v1480_v48, %v4830_v63  ;;  %3798 = vmatmul.mubr.msk.f32.gmra.mxu0 %vm1308_vm4, %v1508_v24 }
 0x3f1   : > { %v1509_v16 = vadd.f32 %v1501_v55, %v4408_v52  ;;  %v1678_v52 = vpop.permute.xlu0 %1677 }
 0x3f2   : > { %v1485_v20 = vpop.permute.xlu1 %1484 }
 0x3f3   : > { %v1502_v1 = vmul.f32 %v1485_v20, %v4835_v27  ;;  %3800 = vmatprep.mubr.msk.f32.mxu0 %vm1308_vm4, %v1509_v16 }
 0x3f5   : > { %v1510_v39 = vadd.f32 %v1502_v1, %v4401_v45 }
 0x3f6   : > { %v1490_v56 = vpop.permute.xlu1 %1489 }
 0x3f7   : > { %v1503_v10 = vmul.f32 %v1490_v56, %v4840_v62  ;;  %3801 = vmatmul.mubr.msk.f32.gmra.mxu0 %vm1308_vm4, %v1510_v39  ;;  %v1674_v62 = vpop.permute.xlu0 %1673  ;;  %v4144_v39 = vld [vmem:[%s4222_s19 + $0x48] sm:$0xff]  ;;  %v4145_v56 = vld [vmem:[%s4222_s19 + $0x50] sm:$0xff] }
 0x3f9   : > { %v1511_v35 = vadd.f32 %v1503_v10, %v4410_v53  ;;  %v4146_v10 = vld [vmem:[%s4222_s19 + $0x58] sm:$0xff] }
 0x3fa   : > { %v1495_v15 = vpop.permute.xlu1 %1494 }
 0x3fb   : > { %v1504_v63 = vmul.f32 %v1495_v15, %v4845_v43  ;;  %3803 = vmatprep.mubr.msk.f32.mxu0 %vm1308_vm4, %v1511_v35  ;;  %v1670_v43 = vpop.permute.xlu0 %1669  ;;  %v4148_v35 = vld [vmem:[%s4222_s19 + $0x68] sm:$0xff]  ;;  %v4149_v15 = vld [vmem:[%s4222_s19 + $0x70] sm:$0xff] }
 0x3fd   : > { %v1512_v22 = vadd.f32 %v1504_v63, %v4406_v49  ;;  %v4150_v63 = vld [vmem:[%s4222_s19 + $0x78] sm:$0xff] }
 0x3fe   : > { %v1680_v27 = vpop.permute.xlu1 %1679 }
 0x3ff   : > { %3804 = vmatmul.mubr.msk.f32.gmra.mxu0 %vm1308_vm4, %v1512_v22  ;;  %3806 = vmatprep.subr.mxu0 %v1680_v27  ;;  %v1666_v46 = vpop.permute.xlu0 %1665  ;;  %v4152_v22 = vld [vmem:[%s4222_s19 + $0x88] sm:$0xff] }
 0x400   : > { %3807 = vmatpush3.msra.mxu0 %v1680_v27  ;;  %v4153_v27 = vld [vmem:[%s4222_s19 + $0x90] sm:$0xff] }
 0x401   : > { %3808 = vmatprep.subr.mxu0 %v1678_v52 }
 0x402   : > { %3809 = vmatpush3.msra.mxu0 %v1678_v52  ;;  %v1676_v45 = vpop.permute.xlu1 %1675  ;;  %v4151_v52 = vld [vmem:[%s4222_s19 + $0x80] sm:$0xff] }
 0x403   : > { %3810 = vmatprep.subr.mxu0 %v1676_v45 }
 0x404   : > { %3811 = vmatpush3.msra.mxu0 %v1676_v45  ;;  %v4154_v45 = vld [vmem:[%s4222_s19 + $0x98] sm:$0xff] }
 0x405   : > { %3812 = vmatprep.subr.mxu0 %v1674_v62 }
 0x406   : > { %3813 = vmatpush3.msra.mxu0 %v1674_v62  ;;  %v1672_v53 = vpop.permute.xlu1 %1671  ;;  %v4155_v62 = vld [vmem:[%s4222_s19 + $0xa0] sm:$0xff] }
 0x407   : > { %3814 = vmatprep.subr.mxu0 %v1672_v53 }
 0x408   : > { %3815 = vmatpush3.msra.mxu0 %v1672_v53  ;;  %v4156_v53 = vld [vmem:[%s4222_s19 + $0xa8] sm:$0xff] }
 0x409   : > { %3816 = vmatprep.subr.mxu0 %v1670_v43 }
 0x40a   : > { %3817 = vmatpush3.msra.mxu0 %v1670_v43  ;;  %v1668_v49 = vpop.permute.xlu1 %1667  ;;  %v4157_v43 = vld [vmem:[%s4222_s19 + $0xb0] sm:$0xff] }
 0x40b   : > { %3818 = vmatprep.subr.mxu0 %v1668_v49 }
 0x40c   : > { %3819 = vmatpush3.msra.mxu0 %v1668_v49  ;;  %v4158_v49 = vld [vmem:[%s4222_s19 + $0xb8] sm:$0xff] }
 0x40d   : > { %3820 = vmatprep.subr.mxu0 %v1666_v46 }
 0x40e   : > { %3821 = vmatpush3.msra.mxu0 %v1666_v46  ;;  %v1855_v1 = vpop.permute.xlu1 %1854  ;;  %v4159_v46 = vld [vmem:[%s4222_s19 + $0xc0] sm:$0xff] }
 0x40f   : > { %3834 = vmatprep.subr.mxu1 %v1855_v1 }
 0x410   : > { %3835 = vmatpush3.msra.mxu1 %v1855_v1 }
 0x411   : > { %3837 = vmatmul.mubr.msk.f32.vlgmr.msra.gmra.mxu1 %vm227_vm0, %v4144_v39  ;;  %2275 = vmatprep.subr.mxu1 %v5595_v40 }
 0x412   : > { %3839 = vmatprep.mubr.msk.f32.mxu1 %vm227_vm0, %v4145_v56 }
 0x415   : > { %3840 = vmatmul.mubr.msk.f32.gmra.mxu1 %vm227_vm0, %v4146_v10 }
 0x4a7   : > { %v3796_v2 = vpop.f32.mrf.mxu0 }
 0x4a8   : > { %v1613_v61 = vadd.f32 %v3796_v2, %v3375_v11  ;;  %v4161_v2 = vld [vmem:[%s4222_s19 + $0xd0] sm:$0xff] }
 0x4a9   : > { %v1607_v9 = vpop.f32.mrf.mxu0 }
 0x4aa   : > { %v1608_v19 = vadd.f32 %v3375_v11, %v1607_v9  ;;  %v1647_v32 = vmax.f32 %v1613_v61, 0.0  ;;  %v4162_v61 = vld [vmem:[%s4222_s19 + $0xd8] sm:$0xff]  ;;  %v4163_v9 = vld [vmem:[%s4222_s19 + $0xe0] sm:$0xff] }
 0x4ac   : > { %v1646_v36 = vmax.f32 %v1608_v19, 0.0  ;;  %v4164_v19 = vld [vmem:[%s4222_s19 + $0xe8] sm:$0xff] }
 0x4ae   : > { %3822 = vmatprep.mubr.msk.f32.mxu0 %vm865_vm1, %v1646_v36  ;;  %v4165_v36 = vld [vmem:[%s4222_s19 + $0xf0] sm:$0xff] }
 0x4af   : > { %v3799_v23 = vpop.f32.mrf.mxu0  ;;  %3823 = vmatmul.mubr.msk.f32.vlgmr.msra.gmra.mxu0 %vm865_vm1, %v1647_v32  ;;  %v4166_v32 = vld [vmem:[%s4222_s19 + $0xf8] sm:$0xff] }
 0x4b0   : > { %v1623_v12 = vadd.f32 %v3799_v23, %v3375_v11  ;;  %v3384_v23 = vld [vmem:[%s5535_s2 + $0x21] ss:$0 sm:$0xff] }
 0x4b1   : > { %v1617_v8 = vpop.f32.mrf.mxu0 }
 0x4b2   : > { %v1618_v54 = vadd.f32 %v3375_v11, %v1617_v8  ;;  %v1649_v34 = vmax.f32 %v1623_v12, 0.0 }
 0x4b4   : > { %v1648_v41 = vmax.f32 %v1618_v54, 0.0 }
 0x4b6   : > { %3825 = vmatprep.mubr.msk.f32.mxu0 %vm865_vm1, %v1648_v41 }
 0x4b7   : > { %v3802_v0 = vpop.f32.mrf.mxu0  ;;  %3826 = vmatmul.mubr.msk.f32.gmra.mxu0 %vm865_vm1, %v1649_v34 }
 0x4b8   : > { %v1633_v33 = vadd.f32 %v3802_v0, %v3375_v11 }
 0x4b9   : > { %v1627_v21 = vpop.f32.mrf.mxu0 }
 0x4ba   : > { %v1628_v31 = vadd.f32 %v3375_v11, %v1627_v21  ;;  %v1651_v59 = vmax.f32 %v1633_v33, 0.0 }
 0x4bc   : > { %v1650_v29 = vmax.f32 %v1628_v31, 0.0 }
 0x4be   : > { %3828 = vmatprep.mubr.msk.f32.mxu0 %vm865_vm1, %v1650_v29 }
 0x4bf   : > { %v3805_v42 = vpop.f32.mrf.mxu0  ;;  %3829 = vmatmul.mubr.msk.f32.gmra.mxu0 %vm865_vm1, %v1651_v59 }
 0x4c0   : > { %v1643_v24 = vadd.f32 %v3805_v42, %v3375_v11 }
 0x4c1   : > { %v1637_v48 = vpop.f32.mrf.mxu0 }
 0x4c2   : > { %v1638_v55 = vadd.f32 %v3375_v11, %v1637_v48  ;;  %v1653_v20 = vmax.f32 %v1643_v24, 0.0  ;;  %v4160_v11 = vld [vmem:[%s4222_s19 + $0xc8] sm:$0xff] }
 0x4c4   : > { %v1652_v16 = vmax.f32 %v1638_v55, 0.0 }
 0x4c6   : > { %3831 = vmatprep.mubr.msk.f32.mxu0 %vm865_vm1, %v1652_v16 }
 0x4c7   : > { %3832 = vmatmul.mubr.msk.f32.gmra.mxu0 %vm865_vm1, %v1653_v20 }
 0x4c8   : > { %3888 = vmatprep.mubr.msk.f32.mxu0 %vm865_vm1, %v4328_v30  ;;  %v4147_v30 = vld [vmem:[%s4222_s19 + $0x60] sm:$0xff]  ;;  %s4183_s19 = smov 96  }
 0x4c9   : > { %3842 = vmatprep.mubr.msk.f32.mxu1 %vm227_vm0, %v4147_v30 }
 0x4ca   : > { %3843 = vmatmul.mubr.msk.f32.gmra.mxu1 %vm227_vm0, %v4148_v35 }
 0x4cb   : > { %3845 = vmatprep.mubr.msk.f32.mxu1 %vm227_vm0, %v4149_v15 }
 0x4ce   : > { %3846 = vmatmul.mubr.msk.f32.gmra.mxu1 %vm227_vm0, %v4150_v63 }
 0x4cf   : > { %3848 = vmatprep.mubr.msk.f32.mxu1 %vm227_vm0, %v4151_v52 }
 0x4d2   : > { %3849 = vmatmul.mubr.msk.f32.gmra.mxu1 %vm227_vm0, %v4152_v22 }
 0x4d3   : > { %3851 = vmatprep.mubr.msk.f32.mxu1 %vm227_vm0, %v4153_v27 }
 0x4d6   : > { %3852 = vmatmul.mubr.msk.f32.gmra.mxu1 %vm227_vm0, %v4154_v45 }
 0x4d7   : > { %3854 = vmatprep.mubr.msk.f32.mxu1 %vm227_vm0, %v4155_v62 }
 0x4da   : > { %3855 = vmatmul.mubr.msk.f32.gmra.mxu1 %vm227_vm0, %v4156_v53 }
 0x4db   : > { %3857 = vmatprep.mubr.msk.f32.mxu1 %vm227_vm0, %v4157_v43 }
 0x4de   : > { %3858 = vmatmul.mubr.msk.f32.gmra.mxu1 %vm227_vm0, %v4158_v49 }
 0x4df   : > { %3860 = vmatprep.mubr.msk.f32.mxu1 %vm227_vm0, %v4159_v46 }
 0x4e2   : > { %3861 = vmatmul.mubr.msk.f32.gmra.mxu1 %vm227_vm0, %v4160_v11 }
 0x4e3   : > { %3863 = vmatprep.mubr.msk.f32.mxu1 %vm227_vm0, %v4161_v2 }
 0x4e6   : > { %3864 = vmatmul.mubr.msk.f32.gmra.mxu1 %vm227_vm0, %v4162_v61 }
 0x4e7   : > { %3866 = vmatprep.mubr.msk.f32.mxu1 %vm227_vm0, %v4163_v9 }
 0x4ea   : > { %3867 = vmatmul.mubr.msk.f32.gmra.mxu1 %vm227_vm0, %v4164_v19 }
 0x4eb   : > { %3869 = vmatprep.mubr.msk.f32.mxu1 %vm227_vm0, %v4165_v36 }
 0x4ee   : > { %3870 = vmatmul.mubr.msk.f32.gmra.mxu1 %vm227_vm0, %v4166_v32 }
 0x4ef   : > { %3441 = vmatprep.mubr.msk.f32.mxu1 %vm865_vm1, %v4602_v25 }
 0x56f   : > { %v3824_v12 = vpop.f32.mrf.mxu0 }
 0x570   : > { %v1785_v8 = vadd.f32 %v3824_v12, %v3384_v23  ;;  %v5607_v12 = vld [vmem:[#allocation3_spill] sm:$0xff] }
 0x571   : > { %v1779_v54 = vpop.f32.mrf.mxu0 }
 0x572   : > { %vm1819_vm8 = vcmp.ge.f32.partialorder %v1785_v8, 0.0  ;;  %v1827_v41 = vmul.f32 0.01, %v1785_v8  ;;  %v1780_v34 = vadd.f32 %v3384_v23, %v1779_v54  ;;  %v5609_v54 = vld [vmem:[#allocation5_spill] sm:$0xff] }
 0x574   : > { %v5059_v0 = vsel %vm1819_vm8, %v1785_v8, %v1827_v41  ;;  %vm1818_vm10 = vcmp.ge.f32.partialorder %v1780_v34, 0.0  ;;  %v1826_v33 = vmul.f32 0.01, %v1780_v34  ;;  %v5608_v8 = vld [vmem:[#allocation4_spill] sm:$0xff]  ;;  %v5610_v41 = vld [vmem:[#allocation6_spill] sm:$0xff] }
 0x575   : > { %5598 = vst [vmem:[#allocation24_spill] sm:$0xff] %v5059_v0  ;;  %v2413_v21 = vmul.f32 %v5059_v0, %v5059_v0 }
 0x576   : > { %v5063_v31 = vsel %vm1818_vm10, %v1780_v34, %v1826_v33  ;;  %v5614_v34 = vld [vmem:[#allocation10_spill] sm:$0xff]  ;;  %v5615_v33 = vld [vmem:[#allocation11_spill] sm:$0xff] }
 0x577   : > { %5599 = vst [vmem:[#allocation25_spill] sm:$0xff] %v5063_v31  ;;  %v3827_v25 = vpop.f32.mrf.mxu0  ;;  %v2423_v29 = vsel %vm1308_vm4, %v2413_v21, 0.0  ;;  %v2412_v59 = vmul.f32 %v5063_v31, %v5063_v31  ;;  %v5616_v21 = vld [vmem:[#allocation12_spill] sm:$0xff] }
 0x578   : > { %v1795_v42 = vadd.f32 %v3827_v25, %v3384_v23  ;;  %2424 = vadd.xlane.f32.xlu1 %v2423_v29  ;;  %v5617_v25 = vld [vmem:[#allocation13_spill] sm:$0xff]  ;;  %v5618_v29 = vld [vmem:[#allocation14_spill] sm:$0xff] }
 0x579   : > { %v1789_v24 = vpop.f32.mrf.mxu0  ;;  %v2420_v48 = vsel %vm1308_vm4, %v2412_v59, 0.0  ;;  %v5619_v59 = vld [vmem:[#allocation15_spill] sm:$0xff] }
 0x57a   : > { %vm1821_vm0 = vcmp.ge.f32.partialorder %v1795_v42, 0.0  ;;  %v1829_v55 = vmul.f32 0.01, %v1795_v42  ;;  %v1790_v16 = vadd.f32 %v3384_v23, %v1789_v24  ;;  %2421 = vadd.xlane.f32.xlu0 %v2420_v48  ;;  %v5621_v24 = vld [vmem:[#allocation17_spill] sm:$0xff]  ;;  %v5622_v48 = vld [vmem:[#allocation18_spill] sm:$0xff] }
 0x57c   : > { %v5069_v20 = vsel %vm1821_vm0, %v1795_v42, %v1829_v55  ;;  %vm1820_vm12 = vcmp.ge.f32.partialorder %v1790_v16, 0.0  ;;  %v1828_v1 = vmul.f32 0.01, %v1790_v16  ;;  %v5620_v42 = vld [vmem:[#allocation16_spill] sm:$0xff]  ;;  %v5623_v55 = vld [vmem:[#allocation19_spill] sm:$0xff] }
 0x57d   : > { %5600 = vst [vmem:[#allocation26_spill] sm:$0xff] %v5069_v20  ;;  %v2415_v39 = vmul.f32 %v5069_v20, %v5069_v20 }
 0x57e   : > { %v5073_v56 = vsel %vm1820_vm12, %v1790_v16, %v1828_v1  ;;  %v5624_v16 = vld [vmem:[#allocation20_spill] sm:$0xff]  ;;  %v5625_v1 = vld [vmem:[#allocation21_spill] sm:$0xff] }
 0x57f   : > { %5601 = vst [vmem:[#allocation27_spill] sm:$0xff] %v5073_v56  ;;  %v3830_v10 = vpop.f32.mrf.mxu0  ;;  %v2429_v30 = vsel %vm1308_vm4, %v2415_v39, 0.0  ;;  %v2414_v35 = vmul.f32 %v5073_v56, %v5073_v56  ;;  %v5152_v39 = vpop.f32.mrf.mxu1 }
 0x580   : > { %2430 = vadd.xlane.f32.xlu0 %v2429_v30  ;;  %v1805_v53 = vadd.f32 %v3830_v10, %v3384_v23 }
 0x581   : > { %v1799_v15 = vpop.f32.mrf.mxu0  ;;  %v2426_v52 = vsel %vm1308_vm4, %v2414_v35, 0.0  ;;  %v5154_v10 = vpop.f32.mrf.mxu1 }
 0x582   : > { %v1800_v63 = vadd.f32 %v3384_v23, %v1799_v15  ;;  %v1831_v61 = vmul.f32 0.01, %v1805_v53  ;;  %vm1823_vm10 = vcmp.ge.f32.partialorder %v1805_v53, 0.0 }
 0x583   : > { %v5156_v30 = vpop.f32.mrf.mxu1 }
 0x584   : > { %vm1822_vm14 = vcmp.ge.f32.partialorder %v1800_v63, 0.0  ;;  %v1830_v22 = vmul.f32 0.01, %v1800_v63  ;;  %2427 = vadd.xlane.f32.xlu0 %v2426_v52  ;;  %v5092_v32 = vsel %vm1823_vm10, %v1805_v53, %v1831_v61 }
 0x585   : > { %5605 = vst [vmem:[#allocation31_spill] sm:$0xff] %v5092_v32  ;;  %v5158_v35 = vpop.f32.mrf.mxu1 }
 0x586   : > { %v5079_v27 = vsel %vm1822_vm14, %v1800_v63, %v1830_v22 }
 0x587   : > { %5602 = vst [vmem:[#allocation28_spill] sm:$0xff] %v5079_v27  ;;  %v3833_v45 = vpop.f32.mrf.mxu0  ;;  %v2416_v62 = vmul.f32 %v5079_v27, %v5079_v27 }
 0x588   : > { %v1815_v43 = vadd.f32 %v3833_v45, %v3384_v23 }
 0x589   : > { %v1809_v49 = vpop.f32.mrf.mxu0  ;;  %v2432_v46 = vsel %vm1308_vm4, %v2416_v62, 0.0 }
 0x58a   : > { %vm1825_vm6 = vcmp.ge.f32.partialorder %v1815_v43, 0.0  ;;  %v1833_v11 = vmul.f32 0.01, %v1815_v43  ;;  %v1810_v2 = vadd.f32 %v3384_v23, %v1809_v49  ;;  %2433 = vadd.xlane.f32.xlu0 %v2432_v46  ;;  %v5606_v23 = vld [vmem:[#allocation2_spill] sm:$0xff]  ;;  %v5160_v15 = vpop.f32.mrf.mxu1 }
 0x58c   : > { %vm1824_vm8 = vcmp.ge.f32.partialorder %v1810_v2, 0.0  ;;  %v1832_v9 = vmul.f32 0.01, %v1810_v2  ;;  %v5084_v19 = vsel %vm1825_vm6, %v1815_v43, %v1833_v11  ;;  %v5162_v63 = vpop.f32.mrf.mxu1  ;;  %v5628_v17 = vld [vmem:[#allocation31_spill] sm:$0xff] }
 0x58d   : > { %5603 = vst [vmem:[#allocation29_spill] sm:$0xff] %v5084_v19  ;;  %3872 = vmatprep.subr.mxu0 %v5084_v19 }
 0x58e   : > { %3873 = vmatpush3.msra.mxu0 %v5084_v19  ;;  %v5088_v36 = vsel %vm1824_vm8, %v1810_v2, %v1832_v9  ;;  %v3847_v52 = vpop.f32.mrf.mxu1 }
 0x58f   : > { %5604 = vst [vmem:[#allocation30_spill] sm:$0xff] %v5088_v36  ;;  %3874 = vmatprep.subr.mxu0 %v5088_v36 }
 0x590   : > { %3875 = vmatpush3.msra.mxu0 %v5088_v36  ;;  %v1953_v22 = vpop.f32.mrf.mxu1 }
 0x591   : > { %3876 = vmatprep.subr.mxu0 %v5092_v32 }
 0x592   : > { %3877 = vmatpush3.msra.mxu0 %v5092_v32  ;;  %v3850_v45 = vpop.f32.mrf.mxu1 }
 0x593   : > { %3878 = vmatprep.subr.mxu0 %v5079_v27 }
 0x594   : > { %3879 = vmatpush3.msra.mxu0 %v5079_v27  ;;  %v1963_v43 = vpop.f32.mrf.mxu1 }
 0x595   : > { %3880 = vmatprep.subr.mxu0 %v5069_v20 }
 0x596   : > { %3881 = vmatpush3.msra.mxu0 %v5069_v20  ;;  %v3853_v11 = vpop.f32.mrf.mxu1 }
 0x597   : > { %3882 = vmatprep.subr.mxu0 %v5073_v56 }
 0x598   : > { %3883 = vmatpush3.msra.mxu0 %v5073_v56  ;;  %v1973_v9 = vpop.f32.mrf.mxu1 }
 0x599   : > { %3884 = vmatprep.subr.mxu0 %v5059_v0 }
 0x59a   : > { %3885 = vmatpush3.msra.mxu0 %v5059_v0 }
 0x59b   : > { %3886 = vmatprep.subr.mxu0 %v5063_v31 }
 0x59c   : > { %3887 = vmatpush3.msra.mxu0 %v5063_v31 }
 0x59d   : > { %3889 = vmatmul.mubr.msk.f32.vlgmr.msra.gmra.mxu0 %vm865_vm1, %v4445_v3  ;;  %v5611_v3 = vld [vmem:[#allocation7_spill] sm:$0xff] }
 0x59e   : > { %3891 = vmatprep.mubr.msk.f32.mxu0 %vm865_vm1, %v4449_v4  ;;  %v5612_v4 = vld [vmem:[#allocation8_spill] sm:$0xff] }
 0x5a1   : > { %3892 = vmatmul.mubr.msk.f32.gmra.mxu0 %vm865_vm1, %v4460_v7  ;;  %v5613_v7 = vld [vmem:[#allocation9_spill] sm:$0xff] }
 0x5a2   : > { %3894 = vmatprep.mubr.msk.f32.mxu0 %vm865_vm1, %v5606_v23 }
 0x5a5   : > { %3895 = vmatmul.mubr.msk.f32.gmra.mxu0 %vm865_vm1, %v5607_v12 }
 0x5a6   : > { %3897 = vmatprep.mubr.msk.f32.mxu0 %vm865_vm1, %v5608_v8  ;;  %v3856_v8 = vpop.f32.mrf.mxu1 }
 0x5a9   : > { %3898 = vmatmul.mubr.msk.f32.gmra.mxu0 %vm865_vm1, %v5609_v54 }
 0x5aa   : > { %3900 = vmatprep.mubr.msk.f32.mxu0 %vm865_vm1, %v5610_v41 }
 0x5ad   : > { %3901 = vmatmul.mubr.msk.f32.gmra.mxu0 %vm865_vm1, %v5611_v3  ;;  %v1983_v3 = vpop.f32.mrf.mxu1 }
 0x5ae   : > { %3903 = vmatprep.mubr.msk.f32.mxu0 %vm865_vm1, %v5612_v4 }
 0x5b1   : > { %3904 = vmatmul.mubr.msk.f32.gmra.mxu0 %vm865_vm1, %v5613_v7 }
 0x5b2   : > { %3906 = vmatprep.mubr.msk.f32.mxu0 %vm865_vm1, %v5614_v34  ;;  %v3859_v34 = vpop.f32.mrf.mxu1 }
 0x5b5   : > { %3907 = vmatmul.mubr.msk.f32.gmra.mxu0 %vm865_vm1, %v5615_v33 }
 0x5b6   : > { %3909 = vmatprep.mubr.msk.f32.mxu0 %vm865_vm1, %v5616_v21 }
 0x5b9   : > { %3910 = vmatmul.mubr.msk.f32.gmra.mxu0 %vm865_vm1, %v5617_v25  ;;  %v1993_v25 = vpop.f32.mrf.mxu1 }
 0x5ba   : > { %3912 = vmatprep.mubr.msk.f32.mxu0 %vm865_vm1, %v5618_v29 }
 0x5bd   : > { %3913 = vmatmul.mubr.msk.f32.gmra.mxu0 %vm865_vm1, %v5619_v59  ;;  %v5174_v59 = vpop.f32.mrf.mxu1 }
 0x5be   : > { %3915 = vmatprep.mubr.msk.f32.mxu0 %vm865_vm1, %v5620_v42 }
 0x5bf   : > { %v5178_v20 = vpop.f32.mrf.mxu1 }
 0x5c1   : > { %3916 = vmatmul.mubr.msk.f32.gmra.mxu0 %vm865_vm1, %v5621_v24 }
 0x5c2   : > { %3918 = vmatprep.mubr.msk.f32.mxu0 %vm865_vm1, %v5622_v48 }
 0x5c5   : > { %3919 = vmatmul.mubr.msk.f32.gmra.mxu0 %vm865_vm1, %v5623_v55 }
 0x5c6   : > { %3921 = vmatprep.mubr.msk.f32.mxu0 %vm865_vm1, %v5624_v16 }
 0x5c9   : > { %3922 = vmatmul.mubr.msk.f32.gmra.mxu0 %vm865_vm1, %v5625_v1 }
 0x65d   : > { %v5164_v62 = vpop.f32.mrf.mxu0 }
 0x65f   : > { %v5166_v53 = vpop.f32.mrf.mxu0 }
 0x661   : > { %v5168_v49 = vpop.f32.mrf.mxu0 }
 0x663   : > { %v5170_v46 = vpop.f32.mrf.mxu0 }
 0x665   : > { %v3896_v2 = vpop.f32.mrf.mxu0 }
 0x667   : > { %v5172_v61 = vpop.f32.mrf.mxu0 }
 0x669   : > { %v3899_v23 = vpop.f32.mrf.mxu0 }
 0x66b   : > { %v2138_v12 = vpop.f32.mrf.mxu0 }
 0x66d   : > { %v3902_v54 = vpop.f32.mrf.mxu0 }
 0x66f   : > { %v2148_v41 = vpop.f32.mrf.mxu0 }
 0x671   : > { %v3905_v4 = vpop.f32.mrf.mxu0 }
 0x672   : > { %v2164_v56 = vadd.f32 %v3905_v4, %v3853_v11  ;;  %v2149_v11 = vadd.f32 %v2148_v41, %v1963_v43 }
 0x673   : > { %v2158_v7 = vpop.f32.mrf.mxu0 }
 0x674   : > { %v2159_v36 = vadd.f32 %v2158_v7, %v1973_v9 }
 0x675   : > { %v3908_v33 = vpop.f32.mrf.mxu0 }
 0x676   : > { %v2174_v42 = vadd.f32 %v3908_v33, %v3856_v8  ;;  %v5182_v8 = vpop.f32.mrf.mxu1  ;;  %v2238_v33 = vmax.f32 %v2164_v56, 0.0  ;;  %v2237_v4 = vmax.f32 %v2159_v36, 0.0 }
 0x677   : > { %v2168_v21 = vpop.f32.mrf.mxu0 }
 0x678   : > { %v2169_v55 = vadd.f32 %v2168_v21, %v1983_v3  ;;  %v2240_v0 = vmax.f32 %v2174_v42, 0.0  ;;  %v2154_v3 = vadd.f32 %v3902_v54, %v3850_v45  ;;  %v5188_v9 = vpop.f32.mrf.mxu1  ;;  %v2261_v56 = vadd.f32 1e-07, %v2237_v4 }
 0x679   : > { %v3911_v29 = vpop.f32.mrf.mxu0  ;;  %v2124_v42 = vadd.f32 %v5168_v49, %v5156_v30  ;;  %v2109_v49 = vadd.f32 %v5166_v53, %v5154_v10 }
 0x67a   : > { %v2184_v24 = vadd.f32 %v3911_v29, %v3859_v34  ;;  %v2239_v32 = vmax.f32 %v2169_v55, 0.0  ;;  %v2264_v21 = vadd.f32 1e-07, %v2240_v0  ;;  %v2236_v7 = vmax.f32 %v2154_v3, 0.0  ;;  %v3868_v45 = vpop.f32.mrf.mxu1 }
 0x67b   : > { %v2178_v48 = vpop.f32.mrf.mxu0  ;;  %v2262_v29 = vadd.f32 1e-07, %v2238_v33  ;;  %v2139_v0 = vadd.f32 %v2138_v12, %v1953_v22 }
 0x67c   : > { %v2242_v16 = vmax.f32 %v2184_v24, 0.0  ;;  %v2179_v1 = vadd.f32 %v2178_v48, %v1993_v25  ;;  %v2263_v25 = vadd.f32 1e-07, %v2239_v32  ;;  %v2134_v32 = vadd.f32 %v3896_v2, %v5160_v15  ;;  %v2023_v22 = vpop.f32.mrf.mxu1 }
 0x67d   : > { %v5176_v27 = vpop.f32.mrf.mxu0  ;;  %v2260_v54 = vadd.f32 1e-07, %v2236_v7  ;;  %v2119_v2 = vadd.f32 %v5170_v46, %v5158_v35 }
 0x67e   : > { %v2266_v31 = vadd.f32 1e-07, %v2242_v16  ;;  %v2241_v28 = vmax.f32 %v2179_v1, 0.0  ;;  %v2232_v24 = vmax.f32 %v2134_v32, 0.0  ;;  %v2114_v16 = vadd.f32 %v5164_v62, %v5152_v39 }
 0x67f   : > { %v5180_v19 = vpop.f32.mrf.mxu0  ;;  %v2230_v1 = vmax.f32 %v2124_v42, 0.0  ;;  %v2229_v3 = vmax.f32 %v2119_v2, 0.0  ;;  %v2227_v39 = vmax.f32 %v2109_v49, 0.0 }
 0x680   : > { %v2265_v47 = vadd.f32 1e-07, %v2241_v28  ;;  %2276 = vmatpush1.msra.mxu1 %v2266_v31  ;;  %v2144_v31 = vadd.f32 %v3899_v23, %v3847_v52  ;;  %v2129_v52 = vadd.f32 %v5172_v61, %v5162_v63  ;;  %v2233_v23 = vmax.f32 %v2139_v0, 0.0  ;;  %v3871_v61 = vpop.f32.mrf.mxu1 }
 0x681   : > { %v5184_v34 = vpop.f32.mrf.mxu0  ;;  %2277 = vmatprep.subr.mxu1 %v5595_v40  ;;  %v2256_v30 = vadd.f32 1e-07, %v2232_v24  ;;  %v2253_v62 = vadd.f32 1e-07, %v2229_v3  ;;  %v2251_v7 = vadd.f32 1e-07, %v2227_v39 }
 0x682   : > { %2278 = vmatpush1.msra.mxu1 %v2265_v47  ;;  %v2235_v47 = vmax.f32 %v2149_v11, 0.0  ;;  %v2234_v43 = vmax.f32 %v2144_v31, 0.0  ;;  %v2231_v48 = vmax.f32 %v2129_v52, 0.0  ;;  %v2257_v63 = vadd.f32 1e-07, %v2233_v23  ;;  %v2033_v46 = vpop.f32.mrf.mxu1 }
 0x683   : > { %2279 = vmatprep.subr.mxu1 %v5595_v40  ;;  %v5190_v28 = vpop.f32.mrf.mxu0  ;;  %v2254_v11 = vadd.f32 1e-07, %v2230_v1 }
 0x684   : > { %2280 = vmatpush1.msra.mxu1 %v2264_v21  ;;  %v2259_v41 = vadd.f32 1e-07, %v2235_v47  ;;  %v2258_v15 = vadd.f32 1e-07, %v2234_v43  ;;  %v2255_v35 = vadd.f32 1e-07, %v2231_v48  ;;  %v2204_v47 = vadd.f32 %v5184_v34, %v5182_v8 }
 0x685   : > { %2281 = vmatprep.subr.mxu1 %v5595_v40  ;;  %v3920_v36 = vpop.f32.mrf.mxu0  ;;  %v2228_v21 = vmax.f32 %v2114_v16, 0.0  ;;  %v2189_v8 = vadd.f32 %v5180_v19, %v5178_v20  ;;  %v5626_v19 = vmov 1.0   ;;  %v5630_v48 = vld [vmem:[#allocation29_spill] sm:$0xff] }
 0x686   : > { %2282 = vmatpush1.msra.mxu1 %v2263_v25  ;;  %v2214_v53 = vadd.f32 %v3920_v36, %v3868_v45  ;;  %v2199_v45 = vadd.f32 %v5190_v28, %v5188_v9  ;;  %v2246_v52 = vmax.f32 %v2204_v47, 0.0  ;;  %v2422_v47 = vpop.xlane.xlu0 %2421 }
 0x687   : > { %2283 = vmatprep.subr.mxu1 %v5595_v40  ;;  %v2208_v12 = vpop.f32.mrf.mxu0  ;;  %v2252_v10 = vadd.f32 1e-07, %v2228_v21  ;;  %4110 = vrsqrt.f32 %v2422_v47  ;;  %v2449_v13 = vand.u32 2147483648, %v2422_v47 }
 0x688   : > { %2284 = vmatpush1.msra.mxu1 %v2262_v29  ;;  %v2209_v29 = vadd.f32 %v2208_v12, %v2023_v22  ;;  %v2245_v34 = vmax.f32 %v2199_v45, 0.0  ;;  %v2270_v28 = vadd.f32 1e-07, %v2246_v52  ;;  %v2243_v22 = vmax.f32 %v2189_v8, 0.0 }
 0x689   : > { %2285 = vmatprep.subr.mxu1 %v5595_v40  ;;  %v3923_v55 = vpop.f32.mrf.mxu0 }
 0x68a   : > { %2286 = vmatpush1.msra.mxu1 %v2261_v56  ;;  %v2224_v4 = vadd.f32 %v3923_v55, %v3871_v61  ;;  %v2248_v56 = vmax.f32 %v2214_v53, 0.0  ;;  %v2247_v36 = vmax.f32 %v2209_v29, 0.0  ;;  %v2267_v20 = vadd.f32 1e-07, %v2243_v22 }
 0x68b   : > { %2287 = vmatprep.subr.mxu1 %v5595_v40  ;;  %v2218_v33 = vpop.f32.mrf.mxu0 }
 0x68c   : > { %2288 = vmatpush1.msra.mxu1 %v2260_v54  ;;  %v2219_v25 = vadd.f32 %v2218_v33, %v2033_v46  ;;  %v2250_v31 = vmax.f32 %v2224_v4, 0.0  ;;  %v2194_v54 = vadd.f32 %v5176_v27, %v5174_v59  ;;  %v2272_v23 = vadd.f32 1e-07, %v2248_v56  ;;  %v5335_v56 = vpop.xlane.xlu0 %2430 }
 0x68d   : > { %2289 = vmatprep.subr.mxu1 %v5595_v40  ;;  %v2269_v27 = vadd.f32 1e-07, %v2245_v34 }
 0x68e   : > { %2290 = vmatpush1.msra.mxu1 %v2259_v41  ;;  %v2249_v0 = vmax.f32 %v2219_v25, 0.0  ;;  %v2274_v32 = vadd.f32 1e-07, %v2250_v31  ;;  %v2271_v41 = vadd.f32 1e-07, %v2247_v36  ;;  %v2244_v9 = vmax.f32 %v2194_v54, 0.0 }
 0x68f   : > { %2291 = vmatprep.subr.mxu1 %v5595_v40 }
 0x690   : > { %2292 = vmatpush1.msra.mxu1 %v2258_v15  ;;  %v2273_v43 = vadd.f32 1e-07, %v2249_v0  ;;  %v2268_v59 = vadd.f32 1e-07, %v2244_v9  ;;  %v5331_v0 = vld [vmem:[%s5535_s2 + $0x58] sm:$0xff]  ;;  %v5337_v45 = vpop.xlane.xlu0 %2427 }
 0x691   : > { %2293 = vmatprep.subr.mxu1 %v5595_v40  ;;  %3924 = vmatprep.subr.mxu0 %v5331_v0 }
 0x692   : > { %2294 = vmatpush1.msra.mxu1 %v2257_v63  ;;  %v2419_v63 = vmul.f32 %v5630_v48, %v5630_v48  ;;  %3925 = vmatpush3.msra.mxu0 %v5331_v0 }
 0x693   : > { %2295 = vmatprep.subr.mxu1 %v5595_v40 }
 0x694   : > { %2296 = vmatpush1.msra.mxu1 %v2256_v30  ;;  %v2441_v1 = vsel %vm1308_vm4, %v2419_v63, 0.0  ;;  %v5339_v36 = vpop.xlane.xlu0 %2433  ;;  %v4111_v52 = vpop.eup %4110 }
 0x695   : > { %2297 = vmatprep.subr.mxu1 %v5595_v40  ;;  %v2445_v34 = vmul.f32 %v4111_v52, %v2422_v47  ;;  %vm2474_vm0 = vcmp.eq.f32.partialorder %v5339_v36, inf  ;;  %vm2476_vm12 = vcmp.eq.f32.partialorder %v5339_v36, 0.0 }
 0x696   : > { %2298 = vmatpush1.msra.mxu1 %v2255_v35 }
 0x697   : > { %2299 = vmatprep.subr.mxu1 %v5595_v40 }
 0x698   : > { %2300 = vmatpush1.msra.mxu1 %v2254_v11 }
 0x699   : > { %2301 = vmatprep.subr.mxu1 %v5595_v40 }
 0x69a   : > { %2302 = vmatpush1.msra.mxu1 %v2253_v62 }
 0x69b   : > { %2303 = vmatprep.subr.mxu1 %v5595_v40 }
 0x69c   : > { %2304 = vmatpush1.msra.mxu1 %v2252_v10 }
 0x69d   : > { %2305 = vmatprep.subr.mxu1 %v5595_v40 }
 0x69e   : > { %2306 = vmatpush1.msra.mxu1 %v2251_v7 }
 0x69f   : > { %2323 = vmatprep.subr.mxu1 %v5595_v40 }
 0x6a0   : > { %2324 = vmatpush2.msra.mxu1 %v2274_v32  ;;  %v2425_v32 = vpop.xlane.xlu1 %2424 }
 0x6a1   : > { %2325 = vmatprep.subr.mxu1 %v5595_v40  ;;  %4112 = vrsqrt.f32 %v2425_v32 }
 0x6a2   : > { %2326 = vmatpush2.msra.mxu1 %v2273_v43  ;;  %4114 = vrsqrt.f32 %v5337_v45 }
 0x6a3   : > { %2327 = vmatprep.subr.mxu1 %v5595_v40  ;;  %4116 = vrsqrt.f32 %v5335_v56 }
 0x6a4   : > { %2328 = vmatpush2.msra.mxu1 %v2272_v23 }
 0x6a5   : > { %2329 = vmatprep.subr.mxu1 %v5595_v40 }
 0x6a6   : > { %2330 = vmatpush2.msra.mxu1 %v2271_v41 }
 0x6a7   : > { %2331 = vmatprep.subr.mxu1 %v5595_v40 }
 0x6a8   : > { %2332 = vmatpush2.msra.mxu1 %v2270_v28 }
 0x6a9   : > { %2333 = vmatprep.subr.mxu1 %v5595_v40 }
 0x6aa   : > { %2334 = vmatpush2.msra.mxu1 %v2269_v27 }
 0x6ab   : > { %2335 = vmatprep.subr.mxu1 %v5595_v40 }
 0x6ac   : > { %2336 = vmatpush2.msra.mxu1 %v2268_v59 }
 0x6ad   : > { %2337 = vmatprep.subr.mxu1 %v5595_v40 }
 0x6ae   : > { %2338 = vmatpush2.msra.mxu1 %v2267_v20  ;;  %v4113_v9 = vpop.eup %4112 }
 0x6af   : > { %3442 = vmatmul.mubr.msk.f32.vlgmr.msra.gmra.mxu1 %vm375_vm2, %v5626_v19  ;;  %3972 = vmatprep.subr.mxu1 %v5595_v40  ;;  %vm2446_vm2 = vcmp.eq.f32.partialorder %v2422_v47, inf  ;;  %v2452_v27 = vmul.f32 %v4113_v9, %v2425_v32 }
 0x6b0   : > { %3443 = vmatprep.mubr.msk.f32.mxu1 %vm865_vm1, %v4701_v51  ;;  %v2447_v20 = vsel %vm2446_vm2, %v2422_v47, %v2445_v34 }
 0x6b3   : > { %3444 = vmatmul.mubr.msk.f32.gmra.mxu1 %vm377_vm5, %v5626_v19  ;;  %vm2448_vm5 = vcmp.eq.f32.partialorder %v2422_v47, 0.0  ;;  %v2470_v47 = vand.u32 2147483648, %v5335_v56 }
 0x6b4   : > { %3445 = vmatprep.mubr.msk.f32.mxu1 %vm865_vm1, %v4717_v60 }
 0x6b7   : > { %3446 = vmatmul.mubr.msk.f32.gmra.mxu1 %vm379_vm7, %v5626_v19  ;;  %vm2453_vm7 = vcmp.eq.f32.partialorder %v2425_v32, inf }
 0x6b8   : > { %3447 = vmatprep.mubr.msk.f32.mxu1 %vm865_vm1, %v4733_v44  ;;  %v2417_v44 = vmul.f32 %v5628_v17, %v5628_v17 }
 0x6ba   : > { %v2435_v18 = vsel %vm1308_vm4, %v2417_v44, 0.0 }
 0x6bb   : > { %3448 = vmatmul.mubr.msk.f32.gmra.mxu1 %vm381_vm9, %v5626_v19  ;;  %vm2455_vm9 = vcmp.eq.f32.partialorder %v2425_v32, 0.0 }
 0x6bc   : > { %3449 = vmatprep.mubr.msk.f32.mxu1 %vm865_vm1, %v4749_v37 }
 0x6bf   : > { %3450 = vmatmul.mubr.msk.f32.gmra.mxu1 %vm383_vm11, %v5626_v19  ;;  %vm2460_vm11 = vcmp.eq.f32.partialorder %v5337_v45, inf }
 0x6c0   : > { %3451 = vmatprep.mubr.msk.f32.mxu1 %vm865_vm1, %v4765_v5 }
 0x6c3   : > { %3452 = vmatmul.mubr.msk.f32.gmra.mxu1 %vm385_vm13, %v5626_v19  ;;  %vm2462_vm13 = vcmp.eq.f32.partialorder %v5337_v45, 0.0 }
 0x6c4   : > { %3453 = vmatprep.mubr.msk.f32.mxu1 %vm865_vm1, %v4781_v58  ;;  %v5629_v58 = vld [vmem:[#allocation30_spill] sm:$0xff] }
 0x6c7   : > { %3454 = vmatmul.mubr.msk.f32.gmra.mxu1 %vm387_vm15, %v5626_v19  ;;  %vm2467_vm15 = vcmp.eq.f32.partialorder %v5335_v56, inf }
 0x6c8   : > { %3455 = vmatprep.mubr.msk.f32.mxu1 %vm865_vm1, %v4794_v6  ;;  %v2418_v6 = vmul.f32 %v5629_v58, %v5629_v58 }
 0x6ca   : > { %v2438_v15 = vsel %vm1308_vm4, %v2418_v6, 0.0  ;;  %v2456_v6 = vand.u32 2147483648, %v2425_v32 }
 0x6cb   : > { %3456 = vmatmul.mubr.msk.f32.gmra.mxu1 %vm389_vm3, %v5626_v19  ;;  %v4115_v19 = vpop.eup %4114  ;;  %vm2469_vm3 = vcmp.eq.f32.partialorder %v5335_v56, 0.0 }
 0x6cc   : > { %v2459_v44 = vmul.f32 %v4115_v19, %v5337_v45 }
 0x76f   : > { %v5279_v38 = vpop.f32.mrf.mxu1 }
 0x770   : > { %v2380_v51 = vmul.f32 %v5279_v38, %v5279_v38 }
 0x771   : > { %v2343_v14 = vpop.f32.mrf.mxu1 }
 0x772   : > { %v2388_v60 = vsel %vm1308_vm4, %v2380_v51, 0.0  ;;  %v2450_v14 = vsel %vm2448_vm5, %v2449_v13, %v2447_v20 }
 0x773   : > { %2389 = vadd.xlane.f32.xlu0 %v2388_v60  ;;  %v5286_v26 = vpop.f32.mrf.mxu1  ;;  %v4117_v60 = vpop.eup %4116 }
 0x774   : > { %v2381_v37 = vmul.f32 %v5286_v26, %v5286_v26 }
 0x775   : > { %v2348_v57 = vpop.f32.mrf.mxu1 }
 0x776   : > { %v2391_v5 = vsel %vm1308_vm4, %v2381_v37, 0.0  ;;  %v2454_v57 = vsel %vm2453_vm7, %v2425_v32, %v2452_v27  ;;  %v5631_v32 = vld [vmem:[#allocation23_spill] sm:$0xff]  ;;  %v2477_v27 = vand.u32 2147483648, %v5339_v36  ;;  %vm4182_vm7 = vmmov 0  }
 0x777   : > { %2436 = vadd.xlane.f32.xlu0 %v2435_v18  ;;  %2392 = vadd.xlane.f32.xlu1 %v2391_v5  ;;  %v5294_v12 = vpop.f32.mrf.mxu1  ;;  %v5356_v5 = vld [vmem:[%s5535_s2 + $0x62] ss:$0 sm:$0xff]  ;;  %v2457_v63 = vsel %vm2455_vm9, %v2456_v6, %v2454_v57 }
 0x778   : > { %v2382_v42 = vmul.f32 %v5294_v12, %v5294_v12  ;;  %3988 = vmatprep.mubr.msk.f32.mxu1 %vm4182_vm7, %v5595_v40 }
 0x779   : > { %v2353_v24 = vpop.f32.mrf.mxu1 }
 0x77a   : > { %v2394_v2 = vsel %vm1308_vm4, %v2382_v42, 0.0  ;;  %v2504_v42 = vmul.f32 %v5356_v5, %v2450_v14 }
 0x77b   : > { %2439 = vadd.xlane.f32.xlu0 %v2438_v15  ;;  %2395 = vadd.xlane.f32.xlu1 %v2394_v2  ;;  %v5302_v61 = vpop.f32.mrf.mxu1  ;;  %v2466_v15 = vmul.f32 %v4117_v60, %v5335_v56 }
 0x77c   : > { %v2383_v55 = vmul.f32 %v5302_v61, %v5302_v61 }
 0x77d   : > { %v2358_v16 = vpop.f32.mrf.mxu1 }
 0x77e   : > { %v2397_v30 = vsel %vm1308_vm4, %v2383_v55, 0.0 }
 0x77f   : > { %2442 = vadd.xlane.f32.xlu0 %v2441_v1  ;;  %2398 = vadd.xlane.f32.xlu1 %v2397_v30  ;;  %v5308_v49 = vpop.f32.mrf.mxu1  ;;  %v2461_v1 = vsel %vm2460_vm11, %v5337_v45, %v2459_v44  ;;  %v5366_v30 = vld [vmem:[%s5535_s2 + $0x50] sm:$0xff] }
 0x780   : > { %v2384_v3 = vmul.f32 %v5308_v49, %v5308_v49  ;;  %3926 = vmatprep.subr.mxu0 %v5366_v30 }
 0x781   : > { %v2363_v35 = vpop.f32.mrf.mxu1  ;;  %3927 = vmatpush3.msra.mxu0 %v5366_v30 }
 0x782   : > { %v2400_v46 = vsel %vm1308_vm4, %v2384_v3, 0.0  ;;  %v2463_v35 = vand.u32 2147483648, %v5337_v45 }
 0x783   : > { %2401 = vadd.xlane.f32.xlu1 %v2400_v46  ;;  %v5313_v33 = vpop.f32.mrf.mxu1  ;;  %v2505_v46 = vmul.f32 %v5356_v5, %v2457_v63 }
 0x784   : > { %v2385_v21 = vmul.f32 %v5313_v33, %v5313_v33 }
 0x785   : > { %v2368_v11 = vpop.f32.mrf.mxu1 }
 0x786   : > { %v2403_v4 = vsel %vm1308_vm4, %v2385_v21, 0.0  ;;  %v5376_v21 = vld [vmem:[%s5535_s2 + $0x48] sm:$0xff] }
 0x787   : > { %2404 = vadd.xlane.f32.xlu1 %v2403_v4  ;;  %v5318_v39 = vpop.f32.mrf.mxu1  ;;  %3928 = vmatprep.subr.mxu0 %v5376_v21 }
 0x788   : > { %v2386_v62 = vmul.f32 %v5318_v39, %v5318_v39  ;;  %3929 = vmatpush3.msra.mxu0 %v5376_v21 }
 0x789   : > { %v2373_v25 = vpop.f32.mrf.mxu1  ;;  %3930 = vmatprep.subr.mxu0 %v5631_v32 }
 0x78a   : > { %v2406_v10 = vsel %vm1308_vm4, %v2386_v62, 0.0  ;;  %v2464_v62 = vsel %vm2462_vm13, %v2463_v35, %v2461_v1  ;;  %3931 = vmatpush3.msra.mxu0 %v5631_v32  ;;  %v5632_v32 = vld [vmem:[#allocation25_spill] sm:$0xff] }
 0x78b   : > { %2407 = vadd.xlane.f32.xlu1 %v2406_v10  ;;  %v5323_v53 = vpop.f32.mrf.mxu1  ;;  %v2506_v45 = vmul.f32 %v5356_v5, %v2464_v62 }
 0x78c   : > { %v2387_v31 = vmul.f32 %v5323_v53, %v5323_v53 }
 0x78d   : > { %v2378_v7 = vpop.f32.mrf.mxu1 }
 0x78e   : > { %v2409_v29 = vsel %vm1308_vm4, %v2387_v31, 0.0  ;;  %v2468_v7 = vsel %vm2467_vm15, %v5335_v56, %v2466_v15 }
 0x78f   : > { %2410 = vadd.xlane.f32.xlu0 %v2409_v29  ;;  %v2471_v52 = vsel %vm2469_vm3, %v2470_v47, %v2468_v7  ;;  %v4167_v7 = vld [vmem:[%s5535_s2 + $0x40] sm:$0xff] }
 0x790   : > { %v2507_v56 = vmul.f32 %v5356_v5, %v2471_v52 }
 0x7fc   : > { %v2390_v43 = vpop.xlane.xlu0 %2389 }
 0x7fd   : > { %v2512_v54 = vmax.f32 %v2390_v43, 1e-24 }
 0x7ff   : > { %4118 = vrsqrt.f32 %v2512_v54 }
 0x800   : > { %v5343_v23 = vpop.xlane.xlu0 %2436  ;;  %v2393_v8 = vpop.xlane.xlu1 %2392  ;;  %4120 = vrsqrt.f32 %v5339_v36 }
 0x801   : > { %v2513_v41 = vmax.f32 %v2393_v8, 1e-24  ;;  %vm2481_vm14 = vcmp.eq.f32.partialorder %v5343_v23, inf  ;;  %vm2483_vm6 = vcmp.eq.f32.partialorder %v5343_v23, 0.0 }
 0x803   : > { %4122 = vrsqrt.f32 %v2513_v41 }
 0x804   : > { %v5346_v28 = vpop.xlane.xlu0 %2439  ;;  %v2396_v22 = vpop.xlane.xlu1 %2395  ;;  %4124 = vrsqrt.f32 %v5343_v23 }
 0x805   : > { %v2514_v59 = vmax.f32 %v2396_v22, 1e-24  ;;  %vm2488_vm8 = vcmp.eq.f32.partialorder %v5346_v28, inf  ;;  %vm2490_vm10 = vcmp.eq.f32.partialorder %v5346_v28, 0.0 }
 0x807   : > { %4126 = vrsqrt.f32 %v2514_v59 }
 0x808   : > { %v2399_v51 = vpop.xlane.xlu1 %2398  ;;  %4128 = vrsqrt.f32 %v5346_v28  ;;  %v5351_v18 = vpop.xlane.xlu0 %2442 }
 0x809   : > { %v2515_v37 = vmax.f32 %v2399_v51, 1e-24  ;;  %vm2495_vm2 = vcmp.eq.f32.partialorder %v5351_v18, inf  ;;  %vm2497_vm5 = vcmp.eq.f32.partialorder %v5351_v18, 0.0 }
 0x80b   : > { %4130 = vrsqrt.f32 %v2515_v37  ;;  %v2484_v37 = vand.u32 2147483648, %v5343_v23 }
 0x80c   : > { %v4119_v24 = vpop.eup %4118  ;;  %v2402_v2 = vpop.xlane.xlu1 %2401  ;;  %4132 = vrsqrt.f32 %v5351_v18 }
 0x80d   : > { %v2516_v55 = vmax.f32 %v2402_v2, 1e-24  ;;  %v2528_v16 = vmul.f32 %v4119_v24, %v2504_v42  ;;  %v4121_v3 = vpop.eup %4120  ;;  %v2491_v2 = vand.u32 2147483648, %v5346_v28 }
 0x80e   : > { %v2473_v25 = vmul.f32 %v4121_v3, %v5339_v36  ;;  %v2498_v3 = vand.u32 2147483648, %v5351_v18 }
 0x80f   : > { %4134 = vrsqrt.f32 %v2516_v55  ;;  %2538 = vperm.xlu1 %4077, %v2528_v16  }
 0x810   : > { %v4123_v11 = vpop.eup %4122  ;;  %v2405_v4 = vpop.xlane.xlu1 %2404  ;;  %v2475_v9 = vsel %vm2474_vm0, %v5339_v36, %v2473_v25 }
 0x811   : > { %v2517_v10 = vmax.f32 %v2405_v4, 1e-24  ;;  %v2529_v31 = vmul.f32 %v4123_v11, %v2505_v46  ;;  %v4125_v29 = vpop.eup %4124  ;;  %v2478_v19 = vsel %vm2476_vm12, %v2477_v27, %v2475_v9 }
 0x812   : > { %v2480_v8 = vmul.f32 %v4125_v29, %v5343_v23  ;;  %v2508_v57 = vmul.f32 %v5356_v5, %v2478_v19 }
 0x813   : > { %4136 = vrsqrt.f32 %v2517_v10  ;;  %2543 = vperm.xlu0 %4076, %v2529_v31   ;;  %v1849_v10 = vld [vmem:[%s5535_s2 + $0x78] sm:$0xff]  ;;  %v1848_v31 = vld [vmem:[%s5535_s2 + $0x70] sm:$0xff] }
 0x814   : > { %v4127_v43 = vpop.eup %4126  ;;  %v2408_v54 = vpop.xlane.xlu1 %2407  ;;  %v2482_v60 = vsel %vm2481_vm14, %v5343_v23, %v2480_v8  ;;  %v5634_v8 = vld [vmem:[#allocation27_spill] sm:$0xff] }
 0x815   : > { %v2518_v34 = vmax.f32 %v2408_v54, 1e-24  ;;  %v2530_v41 = vmul.f32 %v4127_v43, %v2506_v45  ;;  %v4129_v22 = vpop.eup %4128  ;;  %v2485_v6 = vsel %vm2483_vm6, %v2484_v37, %v2482_v60 }
 0x816   : > { %v2487_v13 = vmul.f32 %v4129_v22, %v5346_v28  ;;  %v2509_v63 = vmul.f32 %v5356_v5, %v2485_v6 }
 0x817   : > { %4138 = vrsqrt.f32 %v2518_v34  ;;  %2548 = vperm.xlu1 %4077, %v2530_v41  }
 0x818   : > { %v4131_v59 = vpop.eup %4130  ;;  %v2411_v20 = vpop.xlane.xlu0 %2410  ;;  %v2489_v15 = vsel %vm2488_vm8, %v5346_v28, %v2487_v13  ;;  %vm3184_vm8 = vcmask 31744  }
 0x819   : > { %v2519_v51 = vmax.f32 %v2411_v20, 1e-24  ;;  %v2531_v14 = vmul.f32 %v4131_v59, %v2507_v56  ;;  %v4133_v44 = vpop.eup %4132  ;;  %v2492_v16 = vsel %vm2490_vm10, %v2491_v2, %v2489_v15  ;;  %v5636_v56 = vld [vmem:[#allocation28_spill] sm:$0xff] }
 0x81a   : > { %v2494_v42 = vmul.f32 %v4133_v44, %v5351_v18  ;;  %v2510_v35 = vmul.f32 %v5356_v5, %v2492_v16 }
 0x81b   : > { %4140 = vrsqrt.f32 %v2519_v51  ;;  %2553 = vperm.xlu1 %4077, %v2531_v14  }
 0x81c   : > { %v4135_v36 = vpop.eup %4134  ;;  %v2496_v1 = vsel %vm2495_vm2, %v5351_v18, %v2494_v42  ;;  %v1847_v18 = vld [vmem:[%s5535_s2 + $0x68] sm:$0xff] }
 0x81d   : > { %v2532_v24 = vmul.f32 %v4135_v36, %v2508_v57  ;;  %v2499_v11 = vsel %vm2497_vm5, %v2498_v3, %v2496_v1  ;;  %v3458_v57 = vld [vmem:[%s5535_s2 + $0x60] ss:$0 sm:$0xff] }
 0x81e   : > { %v2511_v28 = vmul.f32 %v5356_v5, %v2499_v11  ;;  %v1846_v5 = vld [vmem:[%s5535_s2 + $0x60] sm:$0xff] }
 0x81f   : > { %2558 = vperm.xlu0 %4076, %v2532_v24  }
 0x820   : > { %v4137_v55 = vpop.eup %4136 }
 0x821   : > { %v2533_v23 = vmul.f32 %v4137_v55, %v2509_v63 }
 0x823   : > { %2563 = vperm.xlu1 %4077, %v2533_v23  }
 0x824   : > { %v4139_v46 = vpop.eup %4138 }
 0x825   : > { %v2534_v4 = vmul.f32 %v4139_v46, %v2510_v35 }
 0x827   : > { %2568 = vperm.xlu0 %4076, %v2534_v4  }
 0x828   : > { %v4141_v62 = vpop.eup %4140 }
 0x829   : > { %v2535_v25 = vmul.f32 %v4141_v62, %v2511_v28 }
 0x82b   : > { %2573 = vperm.xlu1 %4077, %v2535_v25   ;;  %2758 = vrot.lane.b32.xlu0 %v1849_v10, %s4181_s18 }
 0x82f   : > { %2756 = vrot.lane.b32.xlu1 %v1848_v31, %s4181_s18  ;;  %2754 = vrot.lane.b32.xlu0 %v1847_v18, %s4181_s18 }
 0x833   : > { %2752 = vrot.lane.b32.xlu1 %v1846_v5, %s4181_s18  ;;  %2750 = vrot.lane.b32.xlu0 %v5331_v0, %s4181_s18 }
 0x837   : > { %2748 = vrot.lane.b32.xlu1 %v5366_v30, %s4181_s18  ;;  %2746 = vrot.lane.b32.xlu0 %v5376_v21, %s4181_s18  ;;  %v5633_v30 = vld [vmem:[#allocation24_spill] sm:$0xff] }
 0x83b   : > { %2744 = vrot.lane.b32.xlu1 %v4167_v7, %s4181_s18 }
 0x88a   : > { %v2539_v29 = vpop.permute.xlu1 %2538 }
 0x88b   : > { %v2576_v47 = vmul.f32 %v2539_v29, %v5279_v38  ;;  %v5635_v38 = vld [vmem:[#allocation26_spill] sm:$0xff]  ;;  %v3001_v29 = vld [vmem:[%s5535_s2 + $0x98] sm:$0xff] }
 0x88c   : > { %3018 = vrot.lane.b32.xlu0 %v3001_v29, %s4183_s19 }
 0x88d   : > { %v2584_v45 = vadd.f32 %v2576_v47, %v5632_v32  ;;  %v3000_v47 = vld [vmem:[%s5535_s2 + $0x90] sm:$0xff]  ;;  %v5484_v32 = vld [vmem:[%s5535_s2 + $0x88] sm:$0xff] }
 0x88e   : > { %v2544_v43 = vpop.permute.xlu0 %2543  ;;  %3016 = vrot.lane.b32.xlu1 %v3000_v47, %s4183_s19 }
 0x88f   : > { %v2577_v0 = vmul.f32 %v2544_v43, %v5286_v26  ;;  %3932 = vmatprep.mubr.msk.f32.mxu0 %vm1308_vm4, %v2584_v45  ;;  %v5489_v45 = vld [vmem:[%s5535_s2 + $0x80] sm:$0xff] }
 0x890   : > { %3014 = vrot.lane.b32.xlu0 %v5484_v32, %s4183_s19 }
 0x891   : > { %v2585_v54 = vadd.f32 %v2577_v0, %v5633_v30 }
 0x892   : > { %v2549_v52 = vpop.permute.xlu1 %2548  ;;  %3012 = vrot.lane.b32.xlu1 %v5489_v45, %s4183_s19 }
 0x893   : > { %v2578_v21 = vmul.f32 %v2549_v52, %v5294_v12  ;;  %3933 = vmatmul.mubr.msk.f32.vlgmr.msra.gmra.mxu0 %vm1308_vm4, %v2585_v54 }
 0x895   : > { %v2586_v34 = vadd.f32 %v2578_v21, %v5634_v8  ;;  %v3467_v8 = vld [vmem:[%s5535_s2 + $0x61] ss:$0 sm:$0xff] }
 0x896   : > { %v2554_v41 = vpop.permute.xlu1 %2553 }
 0x897   : > { %v2579_v9 = vmul.f32 %v2554_v41, %v5302_v61  ;;  %3935 = vmatprep.mubr.msk.f32.mxu0 %vm1308_vm4, %v2586_v34 }
 0x899   : > { %v2587_v22 = vadd.f32 %v2579_v9, %v5635_v38 }
 0x89a   : > { %v2559_v27 = vpop.permute.xlu0 %2558 }
 0x89b   : > { %v2580_v26 = vmul.f32 %v2559_v27, %v5308_v49  ;;  %3936 = vmatmul.mubr.msk.f32.gmra.mxu0 %vm1308_vm4, %v2587_v22 }
 0x89d   : > { %v2588_v59 = vadd.f32 %v2580_v26, %v5636_v56 }
 0x89e   : > { %v2564_v20 = vpop.permute.xlu1 %2563 }
 0x89f   : > { %v2581_v12 = vmul.f32 %v2564_v20, %v5313_v33  ;;  %3938 = vmatprep.mubr.msk.f32.mxu0 %vm1308_vm4, %v2588_v59 }
 0x8a1   : > { %v2589_v19 = vadd.f32 %v2581_v12, %v5628_v17 }
 0x8a2   : > { %v2569_v13 = vpop.permute.xlu0 %2568 }
 0x8a3   : > { %v2582_v61 = vmul.f32 %v2569_v13, %v5318_v39  ;;  %3939 = vmatmul.mubr.msk.f32.gmra.mxu0 %vm1308_vm4, %v2589_v19 }
 0x8a5   : > { %v2590_v51 = vadd.f32 %v2582_v61, %v5629_v58 }
 0x8a6   : > { %v2574_v14 = vpop.permute.xlu1 %2573  ;;  %v2759_v49 = vpop.permute.xlu0 %2758 }
 0x8a7   : > { %v2583_v60 = vmul.f32 %v2574_v14, %v5323_v53  ;;  %3941 = vmatprep.mubr.msk.f32.mxu0 %vm1308_vm4, %v2590_v51  ;;  %3944 = vmatprep.subr.mxu0 %v2759_v49 }
 0x8a8   : > { %3945 = vmatpush3.msra.mxu0 %v2759_v49 }
 0x8a9   : > { %v2591_v33 = vadd.f32 %v2583_v60, %v5630_v48 }
 0x8aa   : > { %v2757_v44 = vpop.permute.xlu1 %2756  ;;  %v2755_v37 = vpop.permute.xlu0 %2754 }
 0x8ab   : > { %3942 = vmatmul.mubr.msk.f32.gmra.mxu0 %vm1308_vm4, %v2591_v33  ;;  %3946 = vmatprep.subr.mxu0 %v2757_v44 }
 0x8ac   : > { %3947 = vmatpush3.msra.mxu0 %v2757_v44 }
 0x8ad   : > { %3948 = vmatprep.subr.mxu0 %v2755_v37 }
 0x8ae   : > { %v2753_v17 = vpop.permute.xlu1 %2752  ;;  %3949 = vmatpush3.msra.mxu0 %v2755_v37  ;;  %v2751_v58 = vpop.permute.xlu0 %2750  ;;  %v2921_v37 = vld [vmem:[%s4590_s28 + $0x1] ss:$0 sm:$0xff]  ;;  %s4184_s28 = smov 80  }
 0x8af   : > { %3950 = vmatprep.subr.mxu0 %v2753_v17  ;;  %vm2922_vm14 = vcmp.eq.s32.totalorder %v4584_v50, %v2921_v37  ;;  %3106 = vrot.lane.b32.xlu0 %v5484_v32, %s4184_s28 }
 0x8b0   : > { %3951 = vmatpush3.msra.mxu0 %v2753_v17  ;;  %3104 = vrot.lane.b32.xlu1 %v5489_v45, %s4184_s28 }
 0x8b1   : > { %3952 = vmatprep.subr.mxu0 %v2751_v58 }
 0x8b2   : > { %3953 = vmatpush3.msra.mxu0 %v2751_v58  ;;  %v2749_v39 = vpop.permute.xlu1 %2748  ;;  %v2747_v53 = vpop.permute.xlu0 %2746 }
 0x8b3   : > { %3954 = vmatprep.subr.mxu0 %v2749_v39 }
 0x8b4   : > { %3955 = vmatpush3.msra.mxu0 %v2749_v39 }
 0x8b5   : > { %3956 = vmatprep.subr.mxu0 %v2747_v53 }
 0x8b6   : > { %v2745_v48 = vpop.permute.xlu1 %2744  ;;  %3957 = vmatpush3.msra.mxu0 %v2747_v53 }
 0x8b7   : > { %3958 = vmatprep.subr.mxu0 %v2745_v48 }
 0x8b8   : > { %3959 = vmatpush3.msra.mxu0 %v2745_v48 }
 0x953   : > { %v3934_v36 = vpop.f32.mrf.mxu0 }
 0x954   : > { %v2692_v6 = vadd.f32 %v3934_v36, %v3458_v57  ;;  %v3476_v36 = vsel %vm2922_vm14, 1.0, %v5595_v40 }
 0x955   : > { %v2686_v42 = vpop.f32.mrf.mxu0 }
 0x956   : > { %v2687_v24 = vadd.f32 %v3458_v57, %v2686_v42  ;;  %v2726_v2 = vmax.f32 %v2692_v6, 0.0  ;;  %v3017_v42 = vpop.permute.xlu1 %3016 }
 0x958   : > { %v2725_v15 = vmax.f32 %v2687_v24, 0.0 }
 0x95a   : > { %3960 = vmatprep.mubr.msk.f32.mxu0 %vm865_vm1, %v2725_v15  ;;  %v3013_v24 = vpop.permute.xlu1 %3012 }
 0x95b   : > { %v3937_v63 = vpop.f32.mrf.mxu0  ;;  %3961 = vmatmul.mubr.msk.f32.vlgmr.msra.gmra.mxu0 %vm865_vm1, %v2726_v2 }
 0x95c   : > { %v2702_v55 = vadd.f32 %v3937_v63, %v3458_v57 }
 0x95d   : > { %v2696_v16 = vpop.f32.mrf.mxu0 }
 0x95e   : > { %v2697_v23 = vadd.f32 %v3458_v57, %v2696_v16  ;;  %v2728_v3 = vmax.f32 %v2702_v55, 0.0  ;;  %v3105_v55 = vpop.permute.xlu1 %3104  ;;  %v3478_v16 = vld [vmem:[%s5535_s2 + $0xa1] ss:$0 sm:$0xff] }
 0x960   : > { %v2727_v1 = vmax.f32 %v2697_v23, 0.0 }
 0x962   : > { %3963 = vmatprep.mubr.msk.f32.mxu0 %vm865_vm1, %v2727_v1 }
 0x963   : > { %v3940_v35 = vpop.f32.mrf.mxu0  ;;  %3964 = vmatmul.mubr.msk.f32.gmra.mxu0 %vm865_vm1, %v2728_v3 }
 0x964   : > { %v2712_v46 = vadd.f32 %v3940_v35, %v3458_v57 }
 0x965   : > { %v2706_v11 = vpop.f32.mrf.mxu0 }
 0x966   : > { %v2707_v4 = vadd.f32 %v3458_v57, %v2706_v11  ;;  %v2730_v62 = vmax.f32 %v2712_v46, 0.0  ;;  %v3480_v11 = vld [vmem:[%s5535_s2 + $0xa2] ss:$0 sm:$0xff] }
 0x968   : > { %v2729_v28 = vmax.f32 %v2707_v4, 0.0 }
 0x96a   : > { %3966 = vmatprep.mubr.msk.f32.mxu0 %vm865_vm1, %v2729_v28 }
 0x96b   : > { %v3943_v25 = vpop.f32.mrf.mxu0  ;;  %3967 = vmatmul.mubr.msk.f32.gmra.mxu0 %vm865_vm1, %v2730_v62 }
 0x96c   : > { %v2722_v10 = vadd.f32 %v3943_v25, %v3458_v57 }
 0x96d   : > { %v2716_v31 = vpop.f32.mrf.mxu0 }
 0x96e   : > { %v2717_v18 = vadd.f32 %v3458_v57, %v2716_v31  ;;  %v2732_v7 = vmax.f32 %v2722_v10, 0.0  ;;  %v3019_v57 = vpop.permute.xlu0 %3018 }
 0x970   : > { %v2731_v5 = vmax.f32 %v2717_v18, 0.0 }
 0x972   : > { %3969 = vmatprep.mubr.msk.f32.mxu0 %vm865_vm1, %v2731_v5  ;;  %v3015_v50 = vpop.permute.xlu0 %3014 }
 0x973   : > { %3970 = vmatmul.mubr.msk.f32.gmra.mxu0 %vm865_vm1, %v2732_v7 }
 0x976   : > { %v3107_v63 = vpop.permute.xlu0 %3106 }
 0xa1b   : > { %v3962_v43 = vpop.f32.mrf.mxu0 }
 0xa1c   : > { %v2864_v51 = vadd.f32 %v3962_v43, %v3467_v8 }
 0xa1d   : > { %v2858_v0 = vpop.f32.mrf.mxu0 }
 0xa1e   : > { %v2859_v60 = vadd.f32 %v3467_v8, %v2858_v0  ;;  %v2906_v17 = vmul.f32 0.01, %v2864_v51  ;;  %vm2898_vm12 = vcmp.ge.f32.partialorder %v2864_v51, 0.0 }
 0xa20   : > { %v2905_v39 = vmul.f32 0.01, %v2859_v60  ;;  %vm2897_vm6 = vcmp.ge.f32.partialorder %v2859_v60, 0.0  ;;  %v2914_v48 = vsel %vm2898_vm12, %v2864_v51, %v2906_v17 }
 0xa22   : > { %v2913_v6 = vsel %vm2897_vm6, %v2859_v60, %v2905_v39 }
 0xa23   : > { %v3965_v30 = vpop.f32.mrf.mxu0 }
 0xa24   : > { %v2874_v56 = vadd.f32 %v3965_v30, %v3467_v8 }
 0xa25   : > { %v2868_v54 = vpop.f32.mrf.mxu0 }
 0xa26   : > { %v2869_v19 = vadd.f32 %v3467_v8, %v2868_v54  ;;  %v2908_v14 = vmul.f32 0.01, %v2874_v56  ;;  %vm2900_vm3 = vcmp.ge.f32.partialorder %v2874_v56, 0.0 }
 0xa28   : > { %v2907_v33 = vmul.f32 0.01, %v2869_v19  ;;  %vm2899_vm0 = vcmp.ge.f32.partialorder %v2869_v19, 0.0  ;;  %v2916_v58 = vsel %vm2900_vm3, %v2874_v56, %v2908_v14 }
 0xa2a   : > { %v2915_v53 = vsel %vm2899_vm0, %v2869_v19, %v2907_v33 }
 0xa2b   : > { %v3968_v52 = vpop.f32.mrf.mxu0 }
 0xa2c   : > { %v2884_v41 = vadd.f32 %v3968_v52, %v3467_v8 }
 0xa2d   : > { %v2878_v21 = vpop.f32.mrf.mxu0 }
 0xa2e   : > { %v2879_v22 = vadd.f32 %v3467_v8, %v2878_v21  ;;  %v2910_v59 = vmul.f32 0.01, %v2884_v41  ;;  %vm2902_vm13 = vcmp.ge.f32.partialorder %v2884_v41, 0.0 }
 0xa30   : > { %v2909_v13 = vmul.f32 0.01, %v2879_v22  ;;  %vm2901_vm15 = vcmp.ge.f32.partialorder %v2879_v22, 0.0  ;;  %v2918_v49 = vsel %vm2902_vm13, %v2884_v41, %v2910_v59 }
 0xa32   : > { %v2917_v44 = vsel %vm2901_vm15, %v2879_v22, %v2909_v13 }
 0xa33   : > { %v3971_v34 = vpop.f32.mrf.mxu0 }
 0xa34   : > { %v2894_v9 = vadd.f32 %v3971_v34, %v3467_v8 }
 0xa35   : > { %v2888_v38 = vpop.f32.mrf.mxu0 }
 0xa36   : > { %vm2904_vm9 = vcmp.ge.f32.partialorder %v2894_v9, 0.0  ;;  %v2912_v27 = vmul.f32 0.01, %v2894_v9  ;;  %v2889_v26 = vadd.f32 %v3467_v8, %v2888_v38 }
 0xa38   : > { %vm2903_vm11 = vcmp.ge.f32.partialorder %v2889_v26, 0.0  ;;  %v2911_v20 = vmul.f32 0.01, %v2889_v26  ;;  %v2920_v12 = vsel %vm2904_vm9, %v2894_v9, %v2912_v27 }
 0xa39   : > { %3973 = vmatpush3.msra.mxu1 %v2920_v12 }
 0xa3a   : > { %3974 = vmatprep.subr.mxu1 %v5595_v40  ;;  %v2919_v61 = vsel %vm2903_vm11, %v2889_v26, %v2911_v20 }
 0xa3b   : > { %3975 = vmatpush3.msra.mxu1 %v2919_v61 }
 0xa3c   : > { %3976 = vmatprep.subr.mxu1 %v5595_v40 }
 0xa3d   : > { %3977 = vmatpush3.msra.mxu1 %v2918_v49 }
 0xa3e   : > { %3978 = vmatprep.subr.mxu1 %v5595_v40 }
 0xa3f   : > { %3979 = vmatpush3.msra.mxu1 %v2917_v44 }
 0xa40   : > { %3980 = vmatprep.subr.mxu1 %v5595_v40 }
 0xa41   : > { %3981 = vmatpush3.msra.mxu1 %v2916_v58 }
 0xa42   : > { %3982 = vmatprep.subr.mxu1 %v5595_v40 }
 0xa43   : > { %3983 = vmatpush3.msra.mxu1 %v2915_v53 }
 0xa44   : > { %3984 = vmatprep.subr.mxu1 %v5595_v40 }
 0xa45   : > { %3985 = vmatpush3.msra.mxu1 %v2914_v48 }
 0xa46   : > { %3986 = vmatprep.subr.mxu1 %v5595_v40 }
 0xa47   : > { %3987 = vmatpush3.msra.mxu1 %v2913_v6 }
 0xa48   : > { %3989 = vmatmul.mubr.msk.f32.vlgmr.msra.gmra.mxu1 %vm865_vm1, %v3476_v36  ;;  %3991 = vmatprep.subr.mxu1 %v5595_v40 }
 0xa49   : > { %3992 = vmatpush3.msra.mxu1 %v3019_v57  ;;  %3999 = vmatprep.mubr.msk.f32.mxu1 %vm4182_vm7, %v5595_v40 }
 0xa4a   : > { %3993 = vmatprep.subr.mxu1 %v5595_v40 }
 0xa4b   : > { %3994 = vmatpush3.msra.mxu1 %v3017_v42 }
 0xa4c   : > { %3995 = vmatprep.subr.mxu1 %v5595_v40 }
 0xa4d   : > { %3996 = vmatpush3.msra.mxu1 %v3015_v50 }
 0xa4e   : > { %3997 = vmatprep.subr.mxu1 %v5595_v40 }
 0xa4f   : > { %3998 = vmatpush3.msra.mxu1 %v3013_v24 }
 0xa50   : > { %4002 = vmatprep.subr.mxu1 %v5595_v40 }
 0xb08   : > { %v2994_v15 = vpop.f32.mrf.mxu1 }
 0xb09   : > { %4000 = vmatmul.mubr.msk.f32.vlgmr.msra.gmra.mxu1 %vm1308_vm4, %v2994_v15  ;;  %vm3110_vm4 = vcmask 130048  }
 0xb0a   : > { %v3990_v2 = vpop.f32.mrf.mxu1  ;;  %4006 = vmatprep.mubr.msk.f32.mxu1 %vm4182_vm7, %v5595_v40  ;;  %4003 = vmatpush3.msra.mxu1 %v3107_v63 }
 0xb0b   : > { %4004 = vmatprep.subr.mxu1 %v5595_v40 }
 0xb0c   : > { %4005 = vmatpush3.msra.mxu1 %v3105_v55 }
 0xbc9   : > { %v3093_v23 = vpop.f32.mrf.mxu1 }
 0xbca   : > { %v3094_v1 = vadd.f32 %v3478_v16, %v3093_v23 }
 0xbcb   : > { %v4001_v3 = vpop.f32.mrf.mxu1 }
 0xbcc   : > { %vm3097_vm1 = vcmp.ge.f32.partialorder %v3094_v1, 0.0  ;;  %v3098_v35 = vmul.f32 0.01, %v3094_v1 }
 0xbce   : > { %v3099_v46 = vsel %vm3097_vm1, %v3094_v1, %v3098_v35 }
 0xbcf   : > { %4007 = vmatmul.mubr.msk.f32.vlgmr.msra.gmra.mxu1 %vm3110_vm4, %v3099_v46 }
 0xc8f   : > { %v3180_v40 = vpop.f32.mrf.mxu1 }
 0xc90   : > { %v3181_v4 = vadd.f32 %v3480_v11, %v3180_v40 }
 0xc91   : > { %v4008_v28 = vpop.f32.mrf.mxu1 }
 0xc92   : > { %3185 = vst.msk [vmem:[%s188_s21] sm:$0xff] %vm3184_vm8, %v3181_v4 }
 0xc93 PF: > { %s13_s12 = sadd.s32 1, %s4174_s12  }
 0xc94   : > { %p10_p4 = scmp.ge.s32.totalorder %s13_s12, 4  }
 0xc96   :  { %12 = sbr.rel (!%p10_p4) target bundleno = 1 (0x1), region = 65 }

</bundles_post_ra>
